<compile_context>
chip_gen: v7x
topology: tpu7x:2x2x1
jax: 0.10.0
libtpu: 0.0.40
codegen_flags: <defaults>
</compile_context>

<pallas_src>
import jax
import jax.numpy as jnp
from jax.experimental import pallas as pl
from jax.experimental.pallas import tpu as pltpu


def _round_up(x, m):
    return ((x + m - 1) // m) * m


def _deletion_kernel(x_ref, w_ref, m_ref, o_ref):
    # x_ref: (TM, D)  w_ref: (D, D)  m_ref: (TM, 1) {0,1} in x dtype  o_ref: (TM, D)
    x = x_ref[...]
    # MXU matmul with f32 accumulation (bf16 inputs hit the native MXU path).
    y = jnp.dot(x, w_ref[...], preferred_element_type=jnp.float32)
    m = m_ref[...] != 0                      # (TM, 1) bool, broadcasts over D
    # Select without up-casting x: only the matmul result is cast back down.
    o_ref[...] = jnp.where(m, y.astype(o_ref.dtype), x)


def deletion_layer(x, deletion_weight, mask, *, tile_m=512, donate_x=False):
    """x: [N, D], deletion_weight: [D, D], mask: [N] bool (or None).

    For best performance pass x / deletion_weight already in bf16: the HBM
    arrays (the binding resource for this mem-bound kernel) are then half the
    size and the matmul uses the bf16 MXU path with f32 accumulation.
    """
    if mask is None:                         # matches the PyTorch forward
        return x

    N, D = x.shape
    assert deletion_weight.shape == (D, D)
    assert mask.shape == (N,)

    dtype = x.dtype
    itemsize = jnp.dtype(dtype).itemsize
    w = deletion_weight.astype(dtype)
    mask_col = mask.astype(dtype).reshape(N, 1)   # {0,1} column in x's dtype

    # --- choose the row tile -------------------------------------------------
    # Big tiles (512-1024 rows) amortize per-grid-step overhead; keep at least
    # 2 grid steps when N allows so v7x's two TensorCores both get work and the
    # software pipeline has something to overlap.
    tm = min(tile_m, _round_up(N, 8))
    if pl.cdiv(N, tm) < 2 and N > 8:
        tm = _round_up(pl.cdiv(N, 2), 8)
    grid = (pl.cdiv(N, tm),)                 # ragged N is fine: last tile masked

    # --- weight buffering ----------------------------------------------------
    # The weight has a constant index map (resident across the grid) but would
    # still be double-buffered by default.  Only single-buffer it when two
    # copies would eat a meaningful chunk of VMEM (matters on v7x's 64 MiB).
    weight_bytes = D * D * itemsize
    if 2 * weight_bytes > (4 << 20):
        w_spec = pl.BlockSpec((D, D), lambda i: (0, 0),
                              pipeline_mode=pl.Buffered(1))
        w_copies = 1
    else:
        w_spec = pl.BlockSpec((D, D), lambda i: (0, 0))
        w_copies = 2
    # TODO(synk): for very large D (>=2048) also tile the contraction (K) with a
    # grid reduction axis + f32 accumulator scratch instead of a full (D, D) block.

    # --- VMEM budget ---------------------------------------------------------
    vmem_needed = (
        2 * tm * D * itemsize        # x double-buffer
        + 2 * tm * D * itemsize      # out double-buffer
        + w_copies * weight_bytes    # resident weight
        + 2 * tm * 1 * itemsize      # mask column double-buffer
    )
    vmem_limit = max(32 << 20, min(int(vmem_needed * 1.5) + (4 << 20), 64 << 20))

    extra = {}
    if donate_x:
        # Reuse x's HBM buffer for the output (only when x is dead afterwards).
        extra["input_output_aliases"] = {0: 0}

    return pl.pallas_call(
        _deletion_kernel,
        out_shape=jax.ShapeDtypeStruct((N, D), dtype),
        grid_spec=pltpu.PrefetchScalarGridSpec(
            num_scalar_prefetch=0,
            grid=grid,
            in_specs=[
                pl.BlockSpec((tm, D), lambda i: (i, 0)),   # x row-tile
                w_spec,                                    # weight (resident)
                pl.BlockSpec((tm, 1), lambda i: (i, 0)),   # mask column
            ],
            out_specs=pl.BlockSpec((tm, D), lambda i: (i, 0)),
        ),
        compiler_params=pltpu.CompilerParams(
            dimension_semantics=("parallel",),
            vmem_limit_bytes=vmem_limit,
        ),
        **extra,
    )(x, w, mask_col)


def xavier_uniform(key, dim):
    # torch.nn.init.xavier_uniform_ on a (dim, dim) weight: U(-a, a), a = sqrt(6/(2*dim))
    bound = (6.0 / (dim + dim)) ** 0.5
    return jax.random.uniform(key, (dim, dim), jnp.float32, minval=-bound, maxval=bound)


if __name__ == "__main__":
    key = jax.random.PRNGKey(0)
    k_x, k_w, k_m = jax.random.split(key, 3)

    N, D = 1024, 128          # nodes, hidden dim
    x32 = jax.random.normal(k_x, (N, D), jnp.float32)
    W32 = xavier_uniform(k_w, D)
    mask = jax.random.bernoulli(k_m, p=0.3, shape=(N,))   # local nodes to "delete"

    # ---- f32 path: exact module semantics ----------------------------------
    out32 = jax.block_until_ready(deletion_layer(x32, W32, mask))
    ref32 = jnp.where(mask[:, None], x32 @ W32, x32)
    assert out32.shape == (N, D) and out32.dtype == x32.dtype
    assert jnp.allclose(out32, ref32, atol=1e-5, rtol=1e-5), "f32 mismatch vs reference"

    # ---- bf16 path (recommended for perf), ragged N to exercise cdiv grid --
    Nr = 1000
    xb = x32[:Nr].astype(jnp.bfloat16)
    Wb = W32.astype(jnp.bfloat16)
    mr = mask[:Nr]
    outb = jax.block_until_ready(deletion_layer(xb, Wb, mr))
    yb = jnp.dot(xb, Wb, preferred_element_type=jnp.float32).astype(jnp.bfloat16)
    refb = jnp.where(mr[:, None], yb, xb)
    assert outb.shape == (Nr, D) and outb.dtype == jnp.bfloat16
    assert jnp.allclose(outb.astype(jnp.float32), refb.astype(jnp.float32),
                        atol=2e-2, rtol=2e-2), "bf16 mismatch vs reference"

    # mask=None path (module returns x unchanged)
    assert deletion_layer(x32, W32, None) is x32

    print("KERNEL_OK")
</pallas_src>

<mosaic_0001>
module attributes {stable_mosaic.version = 11 : i64} {
  func.func @_deletion_kernel(%arg0: i32, %arg1: memref<512x128xf32, #tpu.memory_space<vmem>>, %arg2: memref<128x128xf32, #tpu.memory_space<vmem>>, %arg3: memref<512x1xf32, #tpu.memory_space<vmem>>, %arg4: memref<512x128xf32, #tpu.memory_space<vmem>>) attributes {dimension_semantics = [#tpu.dimension_semantics<parallel>], iteration_bounds = array<i64: 2>, scalar_prefetch = 0 : i64, scratch_operands = 0 : i64, tpu.core_type = #tpu.core_type<tc>, window_params = [{transform_indices = @transform_0, window_bounds = array<i64: 512, 128>}, {pipeline_mode = #tpu.pipeline_mode<synchronous>, transform_indices = @transform_1, window_bounds = array<i64: 128, 128>}, {transform_indices = @transform_2, window_bounds = array<i64: 512, 1>}, {transform_indices = @transform_3, window_bounds = array<i64: 512, 128>}]} {
    %c0 = arith.constant 0 : index
    %c0_0 = arith.constant 0 : index
    %0 = vector.load %arg1[%c0, %c0_0] : memref<512x128xf32, #tpu.memory_space<vmem>>, vector<512x128xf32>
    %c0_1 = arith.constant 0 : index
    %c0_2 = arith.constant 0 : index
    %1 = vector.load %arg2[%c0_1, %c0_2] : memref<128x128xf32, #tpu.memory_space<vmem>>, vector<128x128xf32>
    %cst = arith.constant dense<0.000000e+00> : vector<512x128xf32>
    %2 = tpu.matmul %0, %1, %cst {dimension_numbers = #tpu.dot_dimension_numbers<[1], [0], [0], [1], [0, 0, 1, 1], [], []>} : vector<512x128xf32>, vector<128x128xf32>, vector<512x128xf32> -> vector<512x128xf32>
    %c0_3 = arith.constant 0 : index
    %c0_4 = arith.constant 0 : index
    %3 = vector.load %arg3[%c0_3, %c0_4] : memref<512x1xf32, #tpu.memory_space<vmem>>, vector<512x1xf32>
    %cst_5 = arith.constant 0.000000e+00 : f32
    %4 = vector.broadcast %cst_5 : f32 to vector<512x1xf32>
    %5 = arith.cmpf one, %3, %4 : vector<512x1xf32>
    %6 = vector.shape_cast %5 : vector<512x1xi1> to vector<512x1xi1>
    %7 = vector.broadcast %6 : vector<512x1xi1> to vector<512x128xi1>
    %8 = arith.select %7, %2, %0 : vector<512x128xi1>, vector<512x128xf32>
    %c0_6 = arith.constant 0 : index
    %c0_7 = arith.constant 0 : index
    %9 = vector.load %arg4[%c0_6, %c0_7] : memref<512x128xf32, #tpu.memory_space<vmem>>, vector<512x128xf32>
    tpu.vector_store %arg4[%c0_6, %c0_7], %8 {strides = array<i32>} : memref<512x128xf32, #tpu.memory_space<vmem>>, vector<512x128xf32>,
    return
  }
  func.func @transform_0(%arg0: i32) -> (i32, i32) {
    %c0_i32 = arith.constant 0 : i32
    %c0_i32_0 = arith.constant 0 : i32
    return %arg0, %c0_i32 : i32, i32
  }
  func.func @transform_1(%arg0: i32) -> (i32, i32) {
    %c0_i32 = arith.constant 0 : i32
    %c0_i32_0 = arith.constant 0 : i32
    %c0_i32_1 = arith.constant 0 : i32
    return %c0_i32, %c0_i32_0 : i32, i32
  }
  func.func @transform_2(%arg0: i32) -> (i32, i32) {
    %c0_i32 = arith.constant 0 : i32
    %c0_i32_0 = arith.constant 0 : i32
    return %arg0, %c0_i32 : i32, i32
  }
  func.func @transform_3(%arg0: i32) -> (i32, i32) {
    %c0_i32 = arith.constant 0 : i32
    %c0_i32_0 = arith.constant 0 : i32
    return %arg0, %c0_i32 : i32, i32
  }
}

</mosaic_0001>

<bundles_post_ra>
// kernel: tpu_custom_call.1
= control target key start
LH: loop header
LB: loop body
LE: loop exit
PB: predicated region body
PF: predicated region fallthrough
CT: control target
= control target key end

     0   :  { %8 = vsyncpa [#allocation3], 0  ;;  %s2756_s0 = inlined_call_operand.vmem [shape: f32[1024,128], index: 0, kind: input, shape index: {}]   ;;  %s2757_s1 = inlined_call_operand.hbm [shape: f32[128,128], index: 1, kind: input, shape index: {}]   ;;  %s2758_s2 = inlined_call_operand.vmem [shape: f32[1024,1], index: 2, kind: input, shape index: {}]   ;;  %s2759_s3 = inlined_call_operand.hbm [shape: f32[1024,128], index: 3, kind: output, shape index: {}]  }
   0x1   :  { %9 = vsyncpa [#allocation4], 0 }
   0x2   :  { %11 = vsyncpa [#allocation4 + $0x1], 0  ;;  %s1803_s12 = smov 0   ;;  %s1805_s13 = smov 0  }
   0x3   :  { %s1807_s14 = smov 0   ;;  %s1809_s15 = smov 0  }
   0x4 LB: > { %s1824_s16 = sadd.s32 4294967295, %s1774_s15   ;;  %s1350_s17 = sadd.s32 4294967294, %s1774_s15   ;;  %s1774_s15 = sphi %s1809_s15, %s2927_s15   ;;  %s1770_s14 = sphi %s1807_s14, %s2926_s14   ;;  %s1766_s13 = sphi %s1805_s13, %s2925_s13   ;;  %s1762_s12 = sphi %s1803_s12, %s2924_s12  }
   0x5   : > { %s1828_s18 = sadd.s32 1, %s1774_s15   ;;  %s97_s19 = sadd.s32 1, %s1770_s14 }
   0x6   : > { %s94_s20 = ssub.s32 %s1774_s15, %s1828_s18  ;;  %p107_p0 = scmp.ne.s32.totalorder %s1770_s14, %s1766_s13 }
   0x7   : > { %p95_p1 = scmp.eq.s32.totalorder %s94_s20, 0  ;;  %p108_p2 = scmp.eq.s32.totalorder %s1824_s16, 1 }
   0x8   : > { %p113_p3 = scmp.ne.s32.totalorder %s1766_s13, %s1762_s12  ;;  %p114_p4 = scmp.eq.s32.totalorder %s1350_s17, 1 }
   0x9   : > { %s1839_s21 = scalar_select %p95_p1, %s1770_s14, %s97_s19  }
   0xa   : > { %p1841_p5 = por %p108_p2, %p107_p0  ;;  %p1845_p6 = por %p114_p4, %p113_p3 }
   0xb   : > { %p1351_p7 = scmp.ge.s32.totalorder %s1774_s15, 1  ;;  %p121_p8 = scmp.lt.s32.totalorder %s1774_s15, 3 }
   0xc   : > { %s2804_s22 = scalar_select %p1841_p5, 1, 0 }
   0xd   : > { %s2805_s23 = scalar_select %p1845_p6, 1, 0 }
   0xe   : > { %p2760_p9 = scmp.eq.s32.totalorder %s1824_s16, 0  ;;  %p1852_p10 = pnand %p1351_p7, %p121_p8 }
   0xf   : > { %s1776_s25 = smov [#allocation2]   ;;  %s1680_s30 = scalar_lea.hbm %s2757_s1, 2048 }
  0x10   : > { %s2806_s24 = scalar_select %p1852_p10, 1, 0 }
  0x11   : > { %s133_s26 = sshll.u32 %s1776_s25, 4  ;;  %p1629_p11 = pneg %p1852_p10  ;;  %s134_s26 = int_to_ptr.vmem [resolvable:$true] %s133_s26 }
  0x12   : > { %p1681_p13 = scmp.ne.s32.totalorder %s2757_s1, %s1680_s30  ;;  %p1687_p3 = scmp.lt.u32.totalorder %s1680_s30, %s2757_s1 }
  0x13   : > { %p1860_p12 = pnand %p2760_p9, %p1629_p11 }
  0x15   : > { %p1682_p0 = pneg %p1860_p12 }
  0x17   : > { %p1683_p1 = pnand %p1682_p0, %p1681_p13 }
  0x19   : > { %p1684_p2 = pneg %p1683_p1 }
  0x1b   : > { %p1689_p4 = pnand %p1687_p3, %p1684_p2 }
  0x1d   : > { %1692 = shalt.err (!%p1689_p4)
}
  0x1e   : > { %s1693_s8 = scalar_lea.vmem %s134_s26, 2048  ;;  %p1701_p9 = scmp.lt.s32.totalorder %s134_s26, %s134_s26 }
  0x1f   : > { %p1694_p7 = scmp.ne.s32.totalorder %s134_s26, %s1693_s8  ;;  %p1702_p6 = scmp.lt.s32.totalorder %s1693_s8, %s1693_s8 }
  0x21   : > { %p1696_p8 = pnand %p1694_p7, %p1682_p0  ;;  %p1703_p5 = por %p1702_p6, %p1701_p9 }
  0x23   : > { %p1697_p11 = pneg %p1696_p8 }
  0x25   : > { %p1704_p10 = pnand %p1703_p5, %p1697_p11 }
  0x27   : > { %1707 = shalt.err (!%p1704_p10)
}
  0x28   : > { %s1777_s9 = smov 128   ;;  %s1778_s10 = smov 8  }
  0x29   : > { %1632 = dma.hbm_to_vmem [thread:$0]  (!%p1860_p12), %s2757_s1, 2048, %s134_s26, [#allocation3], %s1777_s9, %s1777_s9, %s1778_s10  }
  0x2a   : > { %p2808_p13 = scmp.ne.s32.totalorder %s2806_s24, 0 }
  0x2c   : > { %167 = sbr.rel (%p2808_p13) target bundleno = 381 (0x17d), region = 32 }
  0x33   : > { %p2809_p1 = scmp.eq.s32.totalorder %s1824_s16, 0 }
  0x35   : > { %1753 = dma.done.wait (%p2809_p1), [#allocation3], 2048   ;;  %p2810_p0 = pmov %p2809_p1 }
  0x36   : > { %s1357_s19 = sshll.u32 %s1824_s16, 6  ;;  %v2763_v0 = vmov 0   ;;  %v273_v3 = vld [vmem:[#allocation2] sm:$0xff]  ;;  %v274_v4 = vld [vmem:[#allocation2 + $0x8] sm:$0xff]  ;;  %v275_v10 = vld [vmem:[#allocation2 + $0x10] sm:$0xff]  ;;  %s193_s30 = sand.u32 1, %s1766_s13  }
  0x37   : > { %1755 = vsyncadd (%p2810_p0), [#allocation3], 4294965248  ;;  %1679 = vset.pattern.permute.xlu1 %v2763_v0  ;;  %1678 = vset.pattern.permute.xlu0 %v2763_v0  ;;  %p197_p5 = scmp.lt.s32.totalorder %s1357_s19, 127  ;;  %v1575_v9 = vpack.c.bf16 %v274_v4, %v273_v3  ;;  %v276_v11 = vld [vmem:[#allocation2 + $0x18] sm:$0xff]  ;;  %v277_v15 = vld [vmem:[#allocation2 + $0x20] sm:$0xff]  ;;  %s1356_s4 = sshll.u32 %s193_s30, 9 }
  0x38   : > { %v1579_v13 = vpack.c.bf16 %v276_v11, %v275_v10  ;;  %v278_v16 = vld [vmem:[#allocation2 + $0x28] sm:$0xff]  ;;  %v279_v22 = vld [vmem:[#allocation2 + $0x30] sm:$0xff]  ;;  %v280_v23 = vld [vmem:[#allocation2 + $0x38] sm:$0xff]  ;;  %s2504_s5 = scalar_lea.vmem [#allocation5], %s1356_s4  ;;  %s1366_s6 = sshll.u32 %s1824_s16, 13 }
  0x39   : > { %s2929_s19 = smov (!%p197_p5, %s1357_s19), 127  ;;  %1576 = vmatprep.subr.bf16.mxu0 %v1575_v9  ;;  %1607 = vmatprep.subr.bf16.mxu1 %v1575_v9  ;;  %v1583_v19 = vpack.c.bf16 %v278_v16, %v277_v15  ;;  %v1587_v26 = vpack.c.bf16 %v280_v23, %v279_v22  ;;  %v281_v30 = vld [vmem:[#allocation2 + $0x40] sm:$0xff]  ;;  %v282_v31 = vld [vmem:[#allocation2 + $0x48] sm:$0xff]  ;;  %v283_v38 = vld [vmem:[#allocation2 + $0x50] sm:$0xff]  ;;  %s1264_s7 = sshll.u32 %s2504_s5, 4  ;;  %s2702_s7 = int_to_ptr.vmem [resolvable:$true] %s1264_s7 }
  0x3a   : > { %s1358_s20 = sshll.u32 %s2929_s19, 3  ;;  %1578 = vmatpush3.bf16.msra.mxu0 %v1575_v9  ;;  %1615 = vmatpush3.bf16.msra.mxu1 %v1575_v9  ;;  %v1591_v35 = vpack.c.bf16 %v282_v31, %v281_v30  ;;  %v284_v39 = vld [vmem:[#allocation2 + $0x58] sm:$0xff]  ;;  %v285_v45 = vld [vmem:[#allocation2 + $0x60] sm:$0xff]  ;;  %v286_v46 = vld [vmem:[#allocation2 + $0x68] sm:$0xff]  ;;  %s2700_s9 = scalar_lea.hbm %s2759_s3, %s1366_s6 }
  0x3b   : > { %s1897_s26 = scalar_lea.vmem %s2758_s2, %s1358_s20  ;;  %1580 = vmatprep.subr.bf16.mxu0 %v1579_v13  ;;  %1608 = vmatprep.subr.bf16.mxu1 %v1579_v13  ;;  %s1916_s29 = scalar_lea.vmem %s2756_s0, %s1358_s20  ;;  %v1595_v42 = vpack.c.bf16 %v284_v39, %v283_v38  ;;  %v1599_v50 = vpack.c.bf16 %v286_v46, %v285_v45  ;;  %v287_v52 = vld [vmem:[#allocation2 + $0x70] sm:$0xff]  ;;  %v288_v53 = vld [vmem:[#allocation2 + $0x78] sm:$0xff] }
  0x3c   : > { %v676_v1 = vld [vmem:[%s1897_s26 + $0x10] sm:$0xff]  ;;  %v674_v2 = vld [vmem:[%s1897_s26] sm:$0xff]  ;;  %v677_v5 = vld [vmem:[%s1897_s26 + $0x18] sm:$0xff]  ;;  %v1603_v57 = vpack.c.bf16 %v288_v53, %v287_v52  ;;  %s2715_s10 = scalar_lea.sflag [#allocation4], %s193_s30  ;;  %s1708_s11 = scalar_lea.vmem %s2702_s7, 8192 }
  0x3d   : > { %vm740_vm0 = vcmp.ne.f32.partialorder %v676_v1, 0.0  ;;  %vm738_vm1 = vcmp.ne.f32.partialorder %v674_v2, 0.0  ;;  %v675_v6 = vld [vmem:[%s1897_s26 + $0x8] sm:$0xff]  ;;  %vm741_vm2 = vcmp.ne.f32.partialorder %v677_v5, 0.0  ;;  %v678_v14 = vld [vmem:[%s1897_s26 + $0x20] sm:$0xff]  ;;  %v681_v20 = vld [vmem:[%s1897_s26 + $0x38] sm:$0xff]  ;;  %p1709_p6 = scmp.ne.s32.totalorder %s2702_s7, %s1708_s11 }
  0x3e   : > { %v804_v7 = vsel %vm740_vm0, 1, %v2763_v0  ;;  %v802_v8 = vsel %vm738_vm1, 1, %v2763_v0  ;;  %v679_v12 = vld [vmem:[%s1897_s26 + $0x28] sm:$0xff]  ;;  %vm739_vm3 = vcmp.ne.f32.partialorder %v675_v6, 0.0  ;;  %v805_v17 = vsel %vm741_vm2, 1, %v2763_v0  ;;  %v680_v21 = vld [vmem:[%s1897_s26 + $0x30] sm:$0xff]  ;;  %1582 = vmatpush3.bf16.msra.mxu0 %v1579_v13  ;;  %1616 = vmatpush3.bf16.msra.mxu1 %v1579_v13 }
  0x3f   : > { %873 = vperm.xlu1 %1679, %v804_v7   ;;  %867 = vperm.xlu0 %1678, %v802_v8   ;;  %v803_v18 = vsel %vm739_vm3, 1, %v2763_v0  ;;  %vm743_vm4 = vcmp.ne.f32.partialorder %v679_v12, 0.0  ;;  %vm742_vm5 = vcmp.ne.f32.partialorder %v678_v14, 0.0  ;;  %vm745_vm6 = vcmp.ne.f32.partialorder %v681_v20, 0.0  ;;  %v683_v27 = vld [vmem:[%s1897_s26 + $0x48] sm:$0xff]  ;;  %v682_v28 = vld [vmem:[%s1897_s26 + $0x40] sm:$0xff] }
  0x40   : > { %v807_v24 = vsel %vm743_vm4, 1, %v2763_v0  ;;  %v806_v25 = vsel %vm742_vm5, 1, %v2763_v0  ;;  %vm744_vm7 = vcmp.ne.f32.partialorder %v680_v21, 0.0  ;;  %1584 = vmatprep.subr.bf16.mxu0 %v1583_v19  ;;  %1609 = vmatprep.subr.bf16.mxu1 %v1583_v19  ;;  %v1923_v29 = vld [vmem:[%s1916_s29] sm:$0xff]  ;;  %v809_v33 = vsel %vm745_vm6, 1, %v2763_v0  ;;  %v685_v36 = vld [vmem:[%s1897_s26 + $0x58] sm:$0xff] }
  0x41   : > { %v1926_v32 = vld [vmem:[%s1916_s29 + $0x100] sm:$0xff]  ;;  %v808_v34 = vsel %vm744_vm7, 1, %v2763_v0  ;;  %1479 = vmatprep.mubr.f32.mxu0 %v1923_v29  ;;  %vm747_vm8 = vcmp.ne.f32.partialorder %v683_v27, 0.0  ;;  %vm746_vm9 = vcmp.ne.f32.partialorder %v682_v28, 0.0  ;;  %v684_v37 = vld [vmem:[%s1897_s26 + $0x50] sm:$0xff]  ;;  %vm749_vm10 = vcmp.ne.f32.partialorder %v685_v36, 0.0 }
  0x42   : > { %1527 = vmatprep.mubr.f32.mxu1 %v1926_v32  ;;  %1586 = vmatpush3.bf16.msra.mxu0 %v1583_v19  ;;  %v811_v40 = vsel %vm747_vm8, 1, %v2763_v0  ;;  %v810_v41 = vsel %vm746_vm9, 1, %v2763_v0  ;;  %vm748_vm11 = vcmp.ne.f32.partialorder %v684_v37, 0.0  ;;  %v687_v43 = vld [vmem:[%s1897_s26 + $0x68] sm:$0xff]  ;;  %v686_v44 = vld [vmem:[%s1897_s26 + $0x60] sm:$0xff]  ;;  %v813_v47 = vsel %vm749_vm10, 1, %v2763_v0 }
  0x43   : > { %876 = vperm.xlu1 %1679, %v805_v17   ;;  %870 = vperm.xlu0 %1678, %v803_v18   ;;  %v812_v48 = vsel %vm748_vm11, 1, %v2763_v0  ;;  %vm751_vm12 = vcmp.ne.f32.partialorder %v687_v43, 0.0  ;;  %vm750_vm13 = vcmp.ne.f32.partialorder %v686_v44, 0.0  ;;  %v689_v49 = vld [vmem:[%s1897_s26 + $0x78] sm:$0xff]  ;;  %v688_v51 = vld [vmem:[%s1897_s26 + $0x70] sm:$0xff]  ;;  %v691_v56 = vld [vmem:[%s1897_s26 + $0x88] sm:$0xff] }
  0x44   : > { %1617 = vmatpush3.bf16.msra.mxu1 %v1583_v19  ;;  %1588 = vmatprep.subr.bf16.mxu0 %v1587_v26  ;;  %v815_v54 = vsel %vm751_vm12, 1, %v2763_v0  ;;  %v814_v55 = vsel %vm750_vm13, 1, %v2763_v0  ;;  %vm753_vm14 = vcmp.ne.f32.partialorder %v689_v49, 0.0  ;;  %vm752_vm15 = vcmp.ne.f32.partialorder %v688_v51, 0.0  ;;  %v690_v58 = vld [vmem:[%s1897_s26 + $0x80] sm:$0xff]  ;;  %v707_v60 = vld [vmem:[%s1897_s26 + $0x108] sm:$0xff] }
  0x45   : > { %1610 = vmatprep.subr.bf16.mxu1 %v1587_v26  ;;  %v817_v59 = vsel %vm753_vm14, 1, %v2763_v0  ;;  %v706_v61 = vld [vmem:[%s1897_s26 + $0x100] sm:$0xff]  ;;  %v816_v62 = vsel %vm752_vm15, 1, %v2763_v0  ;;  %vm755_vm0 = vcmp.ne.f32.partialorder %v691_v56, 0.0  ;;  %v693_v63 = vld [vmem:[%s1897_s26 + $0x98] sm:$0xff]  ;;  %vm771_vm1 = vcmp.ne.f32.partialorder %v707_v60, 0.0 }
  0x46   : > { %1590 = vmatpush3.bf16.msra.mxu0 %v1587_v26  ;;  %vm770_vm2 = vcmp.ne.f32.partialorder %v706_v61, 0.0  ;;  %vm754_vm3 = vcmp.ne.f32.partialorder %v690_v58, 0.0  ;;  %v692_v1 = vld [vmem:[%s1897_s26 + $0x90] sm:$0xff]  ;;  %v1953_v2 = vsel %vm771_vm1, 1, %v2763_v0  ;;  %v709_v4 = vld [vmem:[%s1897_s26 + $0x118] sm:$0xff]  ;;  %v695_v6 = vld [vmem:[%s1897_s26 + $0xa8] sm:$0xff] }
  0x47   : > { %882 = vperm.xlu1 %1679, %v807_v24   ;;  %879 = vperm.xlu0 %1678, %v806_v25   ;;  %v1956_v3 = vsel %vm770_vm2, 1, %v2763_v0  ;;  %v708_v5 = vld [vmem:[%s1897_s26 + $0x110] sm:$0xff]  ;;  %vm773_vm4 = vcmp.ne.f32.partialorder %v709_v4, 0.0  ;;  %v819_v7 = vsel %vm755_vm0, 1, %v2763_v0  ;;  %v1964_v8 = vld [vmem:[%s1916_s29 + $0x8] sm:$0xff]  ;;  %vm757_vm6 = vcmp.ne.f32.partialorder %v693_v63, 0.0 }
  0x48   : > { %1618 = vmatpush3.bf16.msra.mxu1 %v1587_v26  ;;  %1592 = vmatprep.subr.bf16.mxu0 %v1591_v35  ;;  %vm772_vm5 = vcmp.ne.f32.partialorder %v708_v5, 0.0  ;;  %v1967_v9 = vld [vmem:[%s1916_s29 + $0x108] sm:$0xff]  ;;  %v1970_v10 = vsel %vm773_vm4, 1, %v2763_v0  ;;  %v710_v13 = vld [vmem:[%s1897_s26 + $0x120] sm:$0xff]  ;;  %v818_v14 = vsel %vm754_vm3, 1, %v2763_v0  ;;  %v1980_v15 = vld [vmem:[%s1916_s29 + $0x10] sm:$0xff] }
  0x49   : > { %1611 = vmatprep.subr.bf16.mxu1 %v1591_v35  ;;  %v1973_v11 = vsel %vm772_vm5, 1, %v2763_v0  ;;  %v711_v12 = vld [vmem:[%s1897_s26 + $0x128] sm:$0xff]  ;;  %v1983_v16 = vld [vmem:[%s1916_s29 + $0x110] sm:$0xff]  ;;  %vm756_vm7 = vcmp.ne.f32.partialorder %v692_v1, 0.0  ;;  %vm774_vm9 = vcmp.ne.f32.partialorder %v710_v13, 0.0  ;;  %vm759_vm10 = vcmp.ne.f32.partialorder %v695_v6, 0.0 }
  0x4a   : > { %1594 = vmatpush3.bf16.msra.mxu0 %v1591_v35  ;;  %vm775_vm8 = vcmp.ne.f32.partialorder %v711_v12, 0.0  ;;  %v694_v17 = vld [vmem:[%s1897_s26 + $0xa0] sm:$0xff]  ;;  %v1990_v19 = vsel %vm774_vm9, 1, %v2763_v0  ;;  %v713_v20 = vld [vmem:[%s1897_s26 + $0x138] sm:$0xff]  ;;  %v712_v21 = vld [vmem:[%s1897_s26 + $0x130] sm:$0xff]  ;;  %v821_v22 = vsel %vm757_vm6, 1, %v2763_v0 }
  0x4b   : > { %888 = vperm.xlu1 %1679, %v809_v33   ;;  %885 = vperm.xlu0 %1678, %v808_v34   ;;  %v1987_v18 = vsel %vm775_vm8, 1, %v2763_v0  ;;  %v697_v23 = vld [vmem:[%s1897_s26 + $0xb8] sm:$0xff]  ;;  %v696_v24 = vld [vmem:[%s1897_s26 + $0xb0] sm:$0xff]  ;;  %v699_v25 = vld [vmem:[%s1897_s26 + $0xc8] sm:$0xff]  ;;  %vm777_vm11 = vcmp.ne.f32.partialorder %v713_v20, 0.0  ;;  %vm776_vm12 = vcmp.ne.f32.partialorder %v712_v21, 0.0 }
  0x4c   : > { %1619 = vmatpush3.bf16.msra.mxu1 %v1591_v35  ;;  %1596 = vmatprep.subr.bf16.mxu0 %v1595_v42  ;;  %v820_v26 = vsel %vm756_vm7, 1, %v2763_v0  ;;  %v2002_v27 = vld [vmem:[%s1916_s29 + $0x18] sm:$0xff]  ;;  %v698_v28 = vld [vmem:[%s1897_s26 + $0xc0] sm:$0xff]  ;;  %v2006_v30 = vsel %vm777_vm11, 1, %v2763_v0  ;;  %v2009_v31 = vsel %vm776_vm12, 1, %v2763_v0  ;;  %v715_v33 = vld [vmem:[%s1897_s26 + $0x148] sm:$0xff] }
  0x4d   : > { %1612 = vmatprep.subr.bf16.mxu1 %v1595_v42  ;;  %v714_v34 = vld [vmem:[%s1897_s26 + $0x140] sm:$0xff]  ;;  %v2016_v35 = vld [vmem:[%s1916_s29 + $0x118] sm:$0xff]  ;;  %v823_v37 = vsel %vm759_vm10, 1, %v2763_v0  ;;  %vm758_vm13 = vcmp.ne.f32.partialorder %v694_v17, 0.0  ;;  %vm779_vm14 = vcmp.ne.f32.partialorder %v715_v33, 0.0  ;;  %vm761_vm0 = vcmp.ne.f32.partialorder %v697_v23, 0.0 }
  0x4e   : > { %1598 = vmatpush3.bf16.msra.mxu0 %v1595_v42  ;;  %v2019_v36 = vld [vmem:[%s1916_s29 + $0x20] sm:$0xff]  ;;  %vm778_vm15 = vcmp.ne.f32.partialorder %v714_v34, 0.0  ;;  %vm760_vm1 = vcmp.ne.f32.partialorder %v696_v24, 0.0  ;;  %v2026_v38 = vsel %vm779_vm14, 1, %v2763_v0  ;;  %vm763_vm2 = vcmp.ne.f32.partialorder %v699_v25, 0.0  ;;  %v2037_v43 = vld [vmem:[%s1897_s26 + $0xd8] sm:$0xff] }
  0x4f   : > { %894 = vperm.xlu1 %1679, %v811_v40   ;;  %891 = vperm.xlu0 %1678, %v810_v41   ;;  %v2029_v39 = vsel %vm778_vm15, 1, %v2763_v0  ;;  %v717_v40 = vld [vmem:[%s1897_s26 + $0x158] sm:$0xff]  ;;  %v716_v41 = vld [vmem:[%s1897_s26 + $0x150] sm:$0xff]  ;;  %vm762_vm3 = vcmp.ne.f32.partialorder %v698_v28, 0.0  ;;  %v822_v44 = vsel %vm758_vm13, 1, %v2763_v0  ;;  %v2042_v45 = vld [vmem:[%s1916_s29 + $0x28] sm:$0xff] }
  0x50   : > { %1620 = vmatpush3.bf16.msra.mxu1 %v1595_v42  ;;  %1600 = vmatprep.subr.bf16.mxu0 %v1599_v50  ;;  %v2034_v42 = vld [vmem:[%s1916_s29 + $0x120] sm:$0xff]  ;;  %vm781_vm4 = vcmp.ne.f32.partialorder %v717_v40, 0.0  ;;  %vm780_vm5 = vcmp.ne.f32.partialorder %v716_v41, 0.0  ;;  %v2045_v46 = vld [vmem:[%s1897_s26 + $0xd0] sm:$0xff]  ;;  %v719_v49 = vld [vmem:[%s1897_s26 + $0x168] sm:$0xff]  ;;  %v825_v53 = vsel %vm761_vm0, 1, %v2763_v0 }
  0x51   : > { %1613 = vmatprep.subr.bf16.mxu1 %v1599_v50  ;;  %v2058_v51 = vld [vmem:[%s1916_s29 + $0x128] sm:$0xff]  ;;  %v2061_v52 = vld [vmem:[%s1916_s29 + $0x30] sm:$0xff]  ;;  %vm783_vm6 = vcmp.ne.f32.partialorder %v719_v49, 0.0  ;;  %v2075_v56 = vsel %vm762_vm3, 1, %v2763_v0  ;;  %vm765_vm8 = vcmp.ne.f32.partialorder %v2037_v43, 0.0  ;;  %vm764_vm9 = vcmp.ne.f32.partialorder %v2045_v46, 0.0 }
  0x52   : > { %1602 = vmatpush3.bf16.msra.mxu0 %v1599_v50  ;;  %v720_v60 = vld [vmem:[%s1897_s26 + $0x170] sm:$0xff]  ;;  %v2092_v63 = vld [vmem:[%s1916_s29 + $0x38] sm:$0xff]  ;;  %v722_v6 = vld [vmem:[%s1897_s26 + $0x180] sm:$0xff]  ;;  %p2922_p9 = scmp.ne.s32.totalorder %s2804_s22, 0  ;;  %s1780_s17 = smov [#allocation5]  }
  0x53   : > { %900 = vperm.xlu1 %1679, %v813_v47   ;;  %897 = vperm.xlu0 %1678, %v812_v48   ;;  %v2048_v47 = vsel %vm781_vm4, 1, %v2763_v0  ;;  %v2051_v48 = vsel %vm780_vm5, 1, %v2763_v0  ;;  %v2086_v61 = vld [vmem:[%s1916_s29 + $0x130] sm:$0xff]  ;;  %vm784_vm11 = vcmp.ne.f32.partialorder %v720_v60, 0.0  ;;  %v2095_v1 = vld [vmem:[%s1916_s29 + $0x138] sm:$0xff]  ;;  %v2109_v13 = vld [vmem:[%s1916_s29 + $0x40] sm:$0xff] }
  0x54   : > { %1621 = vmatpush3.bf16.msra.mxu1 %v1599_v50  ;;  %1604 = vmatprep.subr.bf16.mxu0 %v1603_v57  ;;  %v718_v50 = vld [vmem:[%s1897_s26 + $0x160] sm:$0xff]  ;;  %v2101_v5 = vsel %vm784_vm11, 1, %v2763_v0  ;;  %v724_v12 = vld [vmem:[%s1897_s26 + $0x190] sm:$0xff]  ;;  %vm786_vm13 = vcmp.ne.f32.partialorder %v722_v6, 0.0  ;;  %v727_v20 = vld [vmem:[%s1897_s26 + $0x1a8] sm:$0xff]  ;;  %p1710_p10 = pnand %p1709_p6, %p2922_p9  ;;  %s1712_s19 = sshll.u32 %s1780_s17, 4  ;;  %s1713_s19 = int_to_ptr.vmem [resolvable:$false] %s1712_s19 }
  0x55   : > { %1614 = vmatprep.subr.bf16.mxu1 %v1603_v57  ;;  %vm782_vm7 = vcmp.ne.f32.partialorder %v718_v50, 0.0  ;;  %vm788_vm15 = vcmp.ne.f32.partialorder %v724_v12, 0.0  ;;  %v726_v21 = vld [vmem:[%s1897_s26 + $0x1a0] sm:$0xff]  ;;  %vm791_vm0 = vcmp.ne.f32.partialorder %v727_v20, 0.0  ;;  %v729_v25 = vld [vmem:[%s1897_s26 + $0x1b8] sm:$0xff]  ;;  %v731_v33 = vld [vmem:[%s1897_s26 + $0x1c8] sm:$0xff]  ;;  %p1715_p2 = scmp.lt.s32.totalorder %s2702_s7, %s1713_s19 }
  0x56   : > { %1606 = vmatpush3.bf16.msra.mxu0 %v1603_v57  ;;  %v2081_v58 = vsel %vm782_vm7, 1, %v2763_v0  ;;  %v2128_v24 = vsel %vm788_vm15, 1, %v2763_v0  ;;  %v2133_v28 = vsel %vm791_vm0, 1, %v2763_v0  ;;  %v730_v34 = vld [vmem:[%s1897_s26 + $0x1c0] sm:$0xff]  ;;  %v2141_v40 = vld [vmem:[%s1916_s29 + $0x148] sm:$0xff]  ;;  %vm795_vm4 = vcmp.ne.f32.partialorder %v731_v33, 0.0  ;;  %p1711_p12 = pneg %p1710_p10 }
  0x57   : > { %906 = vperm.xlu1 %1679, %v815_v54   ;;  %903 = vperm.xlu0 %1678, %v814_v55   ;;  %v824_v54 = vsel %vm760_vm1, 1, %v2763_v0  ;;  %v2071_v55 = vsel %vm763_vm2, 1, %v2763_v0  ;;  %vm790_vm1 = vcmp.ne.f32.partialorder %v726_v21, 0.0  ;;  %vm793_vm2 = vcmp.ne.f32.partialorder %v729_v25, 0.0  ;;  %v733_v50 = vld [vmem:[%s1897_s26 + $0x1d8] sm:$0xff]  ;;  %v734_v6 = vld [vmem:[%s1897_s26 + $0x1e0] sm:$0xff] }
  0x58   : > { %1622 = vmatpush3.bf16.msra.mxu1 %v1603_v57  ;;  %v2078_v57 = vsel %vm783_vm6, 1, %v2763_v0  ;;  %v2144_v41 = vsel %vm790_vm1, 1, %v2763_v0  ;;  %v2163_v60 = vsel %vm795_vm4, 1, %v2763_v0  ;;  %vm794_vm5 = vcmp.ne.f32.partialorder %v730_v34, 0.0  ;;  %v737_v21 = vld [vmem:[%s1897_s26 + $0x1f8] sm:$0xff]  ;;  %v736_v25 = vld [vmem:[%s1897_s26 + $0x1f0] sm:$0xff] }
  0x59   : > { %1480 = vmatmul.mubr.f32.vlgmr.msra.gmra.mrb[0].mxu0 %v1964_v8  ;;  %vm797_vm6 = vcmp.ne.f32.partialorder %v733_v50, 0.0  ;;  %v702_v33 = vld [vmem:[%s1897_s26 + $0xe0] sm:$0xff]  ;;  %vm798_vm11 = vcmp.ne.f32.partialorder %v734_v6, 0.0  ;;  %v2207_v6 = vld [vmem:[%s1916_s29 + $0x58] sm:$0xff]  ;;  %s1714_s20 = scalar_lea.vmem %s1713_s19, 16384 }
  0x5a   : > { %1482 = vmatprep.mubr.f32.mxu0 %v1980_v15  ;;  %v2173_v12 = vsel %vm797_vm6, 1, %v2763_v0  ;;  %v2188_v50 = vsel %vm798_vm11, 1, %v2763_v0  ;;  %vm766_vm15 = vcmp.ne.f32.partialorder %v702_v33, 0.0  ;;  %v2216_v43 = vld [vmem:[%s1916_s29 + $0x160] sm:$0xff]  ;;  %v705_v46 = vld [vmem:[%s1897_s26 + $0xf8] sm:$0xff]  ;;  %v2230_v33 = vld [vmem:[%s1916_s29 + $0x168] sm:$0xff]  ;;  %p1716_p3 = scmp.lt.s32.totalorder %s1714_s20, %s1708_s11 }
  0x5b   : > { %912 = vperm.xlu1 %1679, %v817_v59   ;;  %909 = vperm.xlu0 %1678, %v816_v62   ;;  %v721_v59 = vld [vmem:[%s1897_s26 + $0x178] sm:$0xff]  ;;  %v723_v62 = vld [vmem:[%s1897_s26 + $0x188] sm:$0xff]  ;;  %2815 = vst [vmem:[#allocation12_spill] sm:$0xff] %v2216_v43 }
  0x5c   : > { %1528 = vmatmul.mubr.f32.vlgmr.msra.gmra.mrb[0].mxu1 %v1967_v9  ;;  %vm785_vm10 = vcmp.ne.f32.partialorder %v721_v59, 0.0  ;;  %vm787_vm12 = vcmp.ne.f32.partialorder %v723_v62, 0.0  ;;  %v732_v59 = vld [vmem:[%s1897_s26 + $0x1d0] sm:$0xff]  ;;  %v735_v62 = vld [vmem:[%s1897_s26 + $0x1e8] sm:$0xff]  ;;  %p1717_p4 = por %p1716_p3, %p1715_p2 }
  0x5d   : > { %1530 = vmatprep.mubr.f32.mxu1 %v1983_v16  ;;  %1483 = vmatmul.mubr.f32.gmra.mrb[2].mxu0 %v2002_v27  ;;  %v2098_v4 = vsel %vm785_vm10, 1, %v2763_v0  ;;  %v2115_v17 = vsel %vm787_vm12, 1, %v2763_v0  ;;  %vm796_vm7 = vcmp.ne.f32.partialorder %v732_v59, 0.0  ;;  %vm799_vm10 = vcmp.ne.f32.partialorder %v735_v62, 0.0 }
  0x5e   : > { %1485 = vmatprep.mubr.f32.mxu0 %v2019_v36  ;;  %v2176_v20 = vsel %vm796_vm7, 1, %v2763_v0  ;;  %v2183_v34 = vsel %vm799_vm10, 1, %v2763_v0  ;;  %vm801_vm12 = vcmp.ne.f32.partialorder %v737_v21, 0.0  ;;  %v2210_v21 = vld [vmem:[%s1916_s29 + $0x158] sm:$0xff]  ;;  %p1718_p7 = pnand %p1717_p4, %p1711_p12 }
  0x5f   : > { %918 = vperm.xlu1 %1679, %v819_v7   ;;  %915 = vperm.xlu0 %1678, %v818_v14   ;;  %v725_v7 = vld [vmem:[%s1897_s26 + $0x198] sm:$0xff]  ;;  %v2112_v14 = vld [vmem:[%s1916_s29 + $0x140] sm:$0xff]  ;;  %v2191_v59 = vsel %vm801_vm12, 1, %v2763_v0 }
  0x60   : > { %1531 = vmatmul.mubr.f32.gmra.mrb[2].mxu1 %v2016_v35  ;;  %2811 = vst [vmem:[#allocation8_spill] sm:$0xff] %v2112_v14  ;;  %vm789_vm14 = vcmp.ne.f32.partialorder %v725_v7, 0.0  ;;  %v2170_v7 = vsel %vm794_vm5, 1, %v2763_v0 }
  0x61   : > { %1533 = vmatprep.mubr.f32.mxu1 %v2034_v42  ;;  %1486 = vmatmul.mubr.f32.gmra.mrb[4].mxu0 %v2042_v45  ;;  %v2125_v23 = vsel %vm789_vm14, 1, %v2763_v0 }
  0x62   : > { %1488 = vmatprep.mubr.f32.mxu0 %v2061_v52 }
  0x63   : > { %924 = vperm.xlu1 %1679, %v821_v22   ;;  %921 = vperm.xlu0 %1678, %v820_v26   ;;  %v2122_v22 = vsel %vm786_vm13, 1, %v2763_v0  ;;  %v728_v26 = vld [vmem:[%s1897_s26 + $0x1b0] sm:$0xff]  ;;  %vm800_vm13 = vcmp.ne.f32.partialorder %v736_v25, 0.0  ;;  %v2213_v25 = vld [vmem:[%s1916_s29 + $0x60] sm:$0xff] }
  0x64   : > { %1534 = vmatmul.mubr.f32.gmra.mrb[4].mxu1 %v2058_v51  ;;  %vm792_vm3 = vcmp.ne.f32.partialorder %v728_v26, 0.0  ;;  %v703_v26 = vld [vmem:[%s1897_s26 + $0xe8] sm:$0xff]  ;;  %v2194_v62 = vsel %vm800_vm13, 1, %v2763_v0  ;;  %2814 = vst [vmem:[#allocation11_spill] sm:$0xff] %v2213_v25 }
  0x65   : > { %1536 = vmatprep.mubr.f32.mxu1 %v2086_v61  ;;  %v2150_v49 = vsel %vm792_vm3, 1, %v2763_v0  ;;  %1489 = vmatmul.mubr.f32.gmra.mrb[6].mxu0 %v2092_v63  ;;  %vm767_vm14 = vcmp.ne.f32.partialorder %v703_v26, 0.0  ;;  %v2227_v26 = vld [vmem:[%s1916_s29 + $0x68] sm:$0xff] }
  0x66   : > { %1491 = vmatprep.mubr.f32.mxu0 %v2109_v13 }
  0x67   : > { %930 = vperm.xlu1 %1679, %v823_v37   ;;  %927 = vperm.xlu0 %1678, %v822_v44   ;;  %v2138_v37 = vld [vmem:[%s1916_s29 + $0x48] sm:$0xff]  ;;  %v2147_v44 = vsel %vm793_vm2, 1, %v2763_v0 }
  0x68   : > { %1537 = vmatmul.mubr.f32.gmra.mrb[6].mxu1 %v2095_v1 }
  0x69   : > { %1539 = vmatprep.mubr.f32.mxu1 %v2112_v14  ;;  %1492 = vmatmul.mubr.f32.gmra.mrb[8].mxu0 %v2138_v37 }
  0x6b   : > { %936 = vperm.xlu1 %1679, %v825_v53   ;;  %933 = vperm.xlu0 %1678, %v824_v54   ;;  %v2157_v53 = vld [vmem:[%s1916_s29 + $0x50] sm:$0xff] }
  0x6c   : > { %2812 = vst [vmem:[#allocation9_spill] sm:$0xff] %v2157_v53  ;;  %v2160_v54 = vld [vmem:[%s1916_s29 + $0x150] sm:$0xff]  ;;  %1540 = vmatmul.mubr.f32.gmra.mrb[8].mxu1 %v2141_v40  ;;  %1494 = vmatprep.mubr.f32.mxu0 %v2157_v53 }
  0x6d   : > { %2813 = vst [vmem:[#allocation10_spill] sm:$0xff] %v2160_v54  ;;  %1542 = vmatprep.mubr.f32.mxu1 %v2160_v54  ;;  %1495 = vmatmul.mubr.f32.gmra.mrb[10].mxu0 %v2207_v6  ;;  %v2816_v54 = vmov 0  }
  0x6e   : > { %v831_v53 = vsel %vm767_vm14, 1, %v2816_v54  ;;  %v830_v14 = vsel %vm766_vm15, 1, %v2816_v54  ;;  %1497 = vmatprep.mubr.f32.mxu0 %v2213_v25 }
  0x6f   : > { %942 = vperm.xlu1 %1679, %v2071_v55   ;;  %939 = vperm.xlu0 %1678, %v2075_v56   ;;  %v829_v55 = vsel %vm765_vm8, 1, %v2763_v0  ;;  %v828_v56 = vsel %vm764_vm9, 1, %v2763_v0  ;;  %v704_v0 = vld [vmem:[%s1897_s26 + $0xf0] sm:$0xff]  ;;  %vm769_vm8 = vcmp.ne.f32.partialorder %v705_v46, 0.0  ;;  %v2254_v46 = vld [vmem:[%s1916_s29 + $0x180] sm:$0xff] }
  0x70   : > { %1543 = vmatmul.mubr.f32.gmra.mrb[10].mxu1 %v2210_v21  ;;  %vm768_vm9 = vcmp.ne.f32.partialorder %v704_v0, 0.0  ;;  %v2245_v0 = vld [vmem:[%s1916_s29 + $0x78] sm:$0xff]  ;;  %2820 = vst [vmem:[#allocation16_spill] sm:$0xff] %v2254_v46 }
  0x71   : > { %1545 = vmatprep.mubr.f32.mxu1 %v2216_v43  ;;  %1498 = vmatmul.mubr.f32.gmra.mrb[12].mxu0 %v2227_v26  ;;  %v833_v43 = vsel %vm769_vm8, 1, %v2816_v54  ;;  %v832_v25 = vsel %vm768_vm9, 1, %v2816_v54  ;;  %v2261_v54 = vld [vmem:[%s1916_s29 + $0x88] sm:$0xff] }
  0x72   : > { %2821 = vst [vmem:[#allocation17_spill] sm:$0xff] %v2261_v54 }
  0x73   : > { %948 = vperm.xlu1 %1679, %v829_v55   ;;  %945 = vperm.xlu0 %1678, %v828_v56   ;;  %v2233_v55 = vld [vmem:[%s1916_s29 + $0x70] sm:$0xff] }
  0x74   : > { %2817 = vst [vmem:[#allocation13_spill] sm:$0xff] %v2233_v55  ;;  %v2236_v56 = vld [vmem:[%s1916_s29 + $0x170] sm:$0xff]  ;;  %1546 = vmatmul.mubr.f32.gmra.mrb[12].mxu1 %v2230_v33  ;;  %1500 = vmatprep.mubr.f32.mxu0 %v2233_v55 }
  0x75   : > { %2818 = vst [vmem:[#allocation14_spill] sm:$0xff] %v2236_v56  ;;  %1548 = vmatprep.mubr.f32.mxu1 %v2236_v56  ;;  %1501 = vmatmul.mubr.f32.gmra.mrb[14].mxu0 %v2245_v0  ;;  %v2264_v56 = vld [vmem:[%s1916_s29 + $0x188] sm:$0xff]  ;;  %v2267_v55 = vld [vmem:[%s1916_s29 + $0x90] sm:$0xff] }
  0x76   : > { %2822 = vst [vmem:[#allocation18_spill] sm:$0xff] %v2264_v56  ;;  %2823 = vst [vmem:[#allocation19_spill] sm:$0xff] %v2267_v55 }
  0x77   : > { %954 = vperm.xlu1 %1679, %v831_v53   ;;  %951 = vperm.xlu0 %1678, %v830_v14   ;;  %v2248_v53 = vld [vmem:[%s1916_s29 + $0x178] sm:$0xff]  ;;  %v2251_v14 = vld [vmem:[%s1916_s29 + $0x80] sm:$0xff] }
  0x78   : > { %2819 = vst [vmem:[#allocation15_spill] sm:$0xff] %v2251_v14  ;;  %1549 = vmatmul.mubr.f32.gmra.mrb[14].mxu1 %v2248_v53  ;;  %1503 = vmatprep.mubr.f32.mxu0 %v2251_v14  ;;  %v2285_v14 = vld [vmem:[%s1916_s29 + $0xa0] sm:$0xff] }
  0x79   : > { %1551 = vmatprep.mubr.f32.mxu1 %v2254_v46  ;;  %1504 = vmatmul.mubr.f32.gmra.mrb[16].mxu0 %v2261_v54  ;;  %v2282_v46 = vld [vmem:[%s1916_s29 + $0x198] sm:$0xff]  ;;  %2827 = vst [vmem:[#allocation23_spill] sm:$0xff] %v2285_v14 }
  0x7a   : > { %1506 = vmatprep.mubr.f32.mxu0 %v2267_v55  ;;  %2826 = vst [vmem:[#allocation22_spill] sm:$0xff] %v2282_v46  ;;  %v2303_v55 = vld [vmem:[%s1916_s29 + $0xb0] sm:$0xff] }
  0x7b   : > { %960 = vperm.xlu1 %1679, %v833_v43   ;;  %957 = vperm.xlu0 %1678, %v832_v25   ;;  %v2270_v43 = vld [vmem:[%s1916_s29 + $0x190] sm:$0xff]  ;;  %v2279_v25 = vld [vmem:[%s1916_s29 + $0x98] sm:$0xff]  ;;  %2831 = vst [vmem:[#allocation27_spill] sm:$0xff] %v2303_v55 }
  0x7c   : > { %2824 = vst [vmem:[#allocation20_spill] sm:$0xff] %v2270_v43  ;;  %1552 = vmatmul.mubr.f32.gmra.mrb[16].mxu1 %v2264_v56  ;;  %2825 = vst [vmem:[#allocation21_spill] sm:$0xff] %v2279_v25 }
  0x7d   : > { %1554 = vmatprep.mubr.f32.mxu1 %v2270_v43  ;;  %1507 = vmatmul.mubr.f32.gmra.mrb[18].mxu0 %v2279_v25  ;;  %v2300_v43 = vld [vmem:[%s1916_s29 + $0x1a8] sm:$0xff] }
  0x7e   : > { %1509 = vmatprep.mubr.f32.mxu0 %v2285_v14  ;;  %2830 = vst [vmem:[#allocation26_spill] sm:$0xff] %v2300_v43  ;;  %v2321_v14 = vld [vmem:[%s1916_s29 + $0xc0] sm:$0xff] }
  0x7f   : > { %966 = vperm.xlu1 %1679, %v1953_v2   ;;  %963 = vperm.xlu0 %1678, %v1956_v3   ;;  %v2288_v2 = vld [vmem:[%s1916_s29 + $0x1a0] sm:$0xff]  ;;  %v2297_v3 = vld [vmem:[%s1916_s29 + $0xa8] sm:$0xff]  ;;  %2835 = vst [vmem:[#allocation31_spill] sm:$0xff] %v2321_v14 }
  0x80   : > { %2828 = vst [vmem:[#allocation24_spill] sm:$0xff] %v2288_v2  ;;  %1555 = vmatmul.mubr.f32.gmra.mrb[18].mxu1 %v2282_v46  ;;  %2829 = vst [vmem:[#allocation25_spill] sm:$0xff] %v2297_v3 }
  0x81   : > { %1557 = vmatprep.mubr.f32.mxu1 %v2288_v2  ;;  %1510 = vmatmul.mubr.f32.gmra.mrb[20].mxu0 %v2297_v3  ;;  %v2318_v2 = vld [vmem:[%s1916_s29 + $0x1b8] sm:$0xff] }
  0x82   : > { %1512 = vmatprep.mubr.f32.mxu0 %v2303_v55  ;;  %2834 = vst [vmem:[#allocation30_spill] sm:$0xff] %v2318_v2  ;;  %v2339_v55 = vld [vmem:[%s1916_s29 + $0xd0] sm:$0xff] }
  0x83   : > { %972 = vperm.xlu1 %1679, %v1970_v10   ;;  %969 = vperm.xlu0 %1678, %v1973_v11   ;;  %v2306_v10 = vld [vmem:[%s1916_s29 + $0x1b0] sm:$0xff]  ;;  %v2315_v11 = vld [vmem:[%s1916_s29 + $0xb8] sm:$0xff]  ;;  %2839 = vst [vmem:[#allocation35_spill] sm:$0xff] %v2339_v55 }
  0x84   : > { %2832 = vst [vmem:[#allocation28_spill] sm:$0xff] %v2306_v10  ;;  %1558 = vmatmul.mubr.f32.gmra.mrb[20].mxu1 %v2300_v43  ;;  %2833 = vst [vmem:[#allocation29_spill] sm:$0xff] %v2315_v11 }
  0x85   : > { %1560 = vmatprep.mubr.f32.mxu1 %v2306_v10  ;;  %1513 = vmatmul.mubr.f32.gmra.mrb[22].mxu0 %v2315_v11  ;;  %v2336_v10 = vld [vmem:[%s1916_s29 + $0x1c8] sm:$0xff] }
  0x86   : > { %1515 = vmatprep.mubr.f32.mxu0 %v2321_v14  ;;  %2838 = vst [vmem:[#allocation34_spill] sm:$0xff] %v2336_v10  ;;  %v2357_v14 = vld [vmem:[%s1916_s29 + $0xe0] sm:$0xff] }
  0x87   : > { %978 = vperm.xlu1 %1679, %v1987_v18   ;;  %975 = vperm.xlu0 %1678, %v1990_v19   ;;  %v2324_v18 = vld [vmem:[%s1916_s29 + $0x1c0] sm:$0xff]  ;;  %v2333_v19 = vld [vmem:[%s1916_s29 + $0xc8] sm:$0xff]  ;;  %2843 = vst [vmem:[#allocation39_spill] sm:$0xff] %v2357_v14 }
  0x88   : > { %2836 = vst [vmem:[#allocation32_spill] sm:$0xff] %v2324_v18  ;;  %1561 = vmatmul.mubr.f32.gmra.mrb[22].mxu1 %v2318_v2  ;;  %2837 = vst [vmem:[#allocation33_spill] sm:$0xff] %v2333_v19 }
  0x89   : > { %1563 = vmatprep.mubr.f32.mxu1 %v2324_v18  ;;  %1516 = vmatmul.mubr.f32.gmra.mrb[24].mxu0 %v2333_v19  ;;  %v2354_v18 = vld [vmem:[%s1916_s29 + $0x1d8] sm:$0xff] }
  0x8a   : > { %1518 = vmatprep.mubr.f32.mxu0 %v2339_v55  ;;  %2842 = vst [vmem:[#allocation38_spill] sm:$0xff] %v2354_v18  ;;  %v2375_v55 = vld [vmem:[%s1916_s29 + $0xf0] sm:$0xff] }
  0x8b   : > { %984 = vperm.xlu1 %1679, %v2006_v30   ;;  %981 = vperm.xlu0 %1678, %v2009_v31   ;;  %v2342_v30 = vld [vmem:[%s1916_s29 + $0x1d0] sm:$0xff]  ;;  %v2351_v31 = vld [vmem:[%s1916_s29 + $0xd8] sm:$0xff]  ;;  %2847 = vst [vmem:[#allocation43_spill] sm:$0xff] %v2375_v55 }
  0x8c   : > { %2840 = vst [vmem:[#allocation36_spill] sm:$0xff] %v2342_v30  ;;  %1564 = vmatmul.mubr.f32.gmra.mrb[24].mxu1 %v2336_v10  ;;  %2841 = vst [vmem:[#allocation37_spill] sm:$0xff] %v2351_v31  ;;  %v2378_v10 = vld [vmem:[%s1916_s29 + $0x1f0] sm:$0xff] }
  0x8d   : > { %1566 = vmatprep.mubr.f32.mxu1 %v2342_v30  ;;  %1519 = vmatmul.mubr.f32.gmra.mrb[26].mxu0 %v2351_v31  ;;  %v2372_v30 = vld [vmem:[%s1916_s29 + $0x1e8] sm:$0xff]  ;;  %2848 = vst [vmem:[#allocation44_spill] sm:$0xff] %v2378_v10 }
  0x8e   : > { %1521 = vmatprep.mubr.f32.mxu0 %v2357_v14  ;;  %2846 = vst [vmem:[#allocation42_spill] sm:$0xff] %v2372_v30 }
  0x8f   : > { %990 = vperm.xlu1 %1679, %v2026_v38   ;;  %987 = vperm.xlu0 %1678, %v2029_v39   ;;  %v2360_v38 = vld [vmem:[%s1916_s29 + $0x1e0] sm:$0xff]  ;;  %v2369_v39 = vld [vmem:[%s1916_s29 + $0xe8] sm:$0xff] }
  0x90   : > { %2844 = vst [vmem:[#allocation40_spill] sm:$0xff] %v2360_v38  ;;  %1567 = vmatmul.mubr.f32.gmra.mrb[26].mxu1 %v2354_v18  ;;  %2845 = vst [vmem:[#allocation41_spill] sm:$0xff] %v2369_v39 }
  0x91   : > { %1569 = vmatprep.mubr.f32.mxu1 %v2360_v38  ;;  %1522 = vmatmul.mubr.f32.gmra.mrb[28].mxu0 %v2369_v39 }
  0x92   : > { %1524 = vmatprep.mubr.f32.mxu0 %v2375_v55 }
  0x93   : > { %996 = vperm.xlu1 %1679, %v2048_v47   ;;  %993 = vperm.xlu0 %1678, %v2051_v48   ;;  %v2387_v47 = vld [vmem:[%s1916_s29 + $0xf8] sm:$0xff] }
  0x94   : > { %1570 = vmatmul.mubr.f32.gmra.mrb[28].mxu1 %v2372_v30  ;;  %2849 = vst [vmem:[#allocation45_spill] sm:$0xff] %v2387_v47  ;;  %v2390_v48 = vld [vmem:[%s1916_s29 + $0x1f8] sm:$0xff] }
  0x95   : > { %1572 = vmatprep.mubr.f32.mxu1 %v2378_v10  ;;  %2850 = vst [vmem:[#allocation46_spill] sm:$0xff] %v2390_v48  ;;  %1525 = vmatmul.mubr.f32.gmra.mrb[30].mxu0 %v2387_v47 }
  0x97   : > { %1002 = vperm.xlu1 %1679, %v2078_v57   ;;  %999 = vperm.xlu0 %1678, %v2081_v58  }
  0x98   : > { %1573 = vmatmul.mubr.f32.gmra.mrb[30].mxu1 %v2390_v48 }
  0x9b   : > { %1008 = vperm.xlu1 %1679, %v2098_v4   ;;  %1005 = vperm.xlu0 %1678, %v2101_v5  }
  0x9f   : > { %1014 = vperm.xlu1 %1679, %v2115_v17   ;;  %1011 = vperm.xlu0 %1678, %v2122_v22  }
  0xa3   : > { %1020 = vperm.xlu1 %1679, %v2125_v23   ;;  %1017 = vperm.xlu0 %1678, %v2128_v24  }
  0xa7   : > { %1026 = vperm.xlu1 %1679, %v2133_v28   ;;  %1023 = vperm.xlu0 %1678, %v2144_v41  }
  0xab   : > { %1032 = vperm.xlu1 %1679, %v2147_v44   ;;  %1029 = vperm.xlu0 %1678, %v2150_v49  }
  0xaf   : > { %1038 = vperm.xlu1 %1679, %v2163_v60   ;;  %1035 = vperm.xlu0 %1678, %v2170_v7  }
  0xb3   : > { %1044 = vperm.xlu1 %1679, %v2173_v12   ;;  %1041 = vperm.xlu0 %1678, %v2176_v20  }
  0xb7   : > { %1050 = vperm.xlu1 %1679, %v2183_v34   ;;  %1047 = vperm.xlu0 %1678, %v2188_v50  }
  0xbb   : > { %1056 = vperm.xlu1 %1679, %v2191_v59   ;;  %1053 = vperm.xlu0 %1678, %v2194_v62  }
  0xbe   : > { %v2412_v57 = vpop.permute.xlu1 %873  ;;  %v2414_v58 = vpop.permute.xlu0 %867 }
  0xbf   : > { %vm1058_vm2 = vcmp.eq.s32.totalorder %v2414_v58, 1  ;;  %vm1060_vm6 = vcmp.eq.s32.totalorder %v2412_v57, 1 }
  0xc2   : > { %v2416_v4 = vpop.permute.xlu1 %876  ;;  %v871_v5 = vpop.permute.xlu0 %870 }
  0xc3   : > { %vm1059_vm0 = vcmp.eq.s32.totalorder %v871_v5, 1  ;;  %vm1061_vm4 = vcmp.eq.s32.totalorder %v2416_v4, 1 }
  0xc6   : > { %v2418_v17 = vpop.permute.xlu1 %882  ;;  %v2420_v22 = vpop.permute.xlu0 %879 }
  0xc7   : > { %vm1063_vm10 = vcmp.eq.s32.totalorder %v2418_v17, 1  ;;  %vm1062_vm12 = vcmp.eq.s32.totalorder %v2420_v22, 1 }
  0xca   : > { %v2422_v23 = vpop.permute.xlu1 %888  ;;  %v2424_v24 = vpop.permute.xlu0 %885 }
  0xcb   : > { %vm1065_vm14 = vcmp.eq.s32.totalorder %v2422_v23, 1  ;;  %vm1064_vm8 = vcmp.eq.s32.totalorder %v2424_v24, 1 }
  0xce   : > { %v2426_v28 = vpop.permute.xlu1 %894  ;;  %v2428_v41 = vpop.permute.xlu0 %891 }
  0xd2   : > { %v2430_v44 = vpop.permute.xlu1 %900  ;;  %v2432_v49 = vpop.permute.xlu0 %897 }
  0xd6   : > { %v2434_v60 = vpop.permute.xlu1 %906  ;;  %v2436_v7 = vpop.permute.xlu0 %903 }
  0xda   : > { %v2438_v12 = vpop.permute.xlu1 %912  ;;  %v2440_v20 = vpop.permute.xlu0 %909 }
  0xde   : > { %v2442_v34 = vpop.permute.xlu1 %918  ;;  %v2444_v50 = vpop.permute.xlu0 %915 }
  0xdf   : > { %2851 = vst [vmem:[#allocation47_spill] sm:$0xff] %v2442_v34  ;;  %2852 = vst [vmem:[#allocation48_spill] sm:$0xff] %v2444_v50 }
  0xe2   : > { %v2446_v59 = vpop.permute.xlu1 %924  ;;  %v2448_v62 = vpop.permute.xlu0 %921 }
  0xe3   : > { %2853 = vst [vmem:[#allocation49_spill] sm:$0xff] %v2446_v59  ;;  %2854 = vst [vmem:[#allocation50_spill] sm:$0xff] %v2448_v62 }
  0xe6   : > { %v2450_v10 = vpop.permute.xlu1 %930  ;;  %v2452_v55 = vpop.permute.xlu0 %927 }
  0xe7   : > { %2855 = vst [vmem:[#allocation51_spill] sm:$0xff] %v2450_v10  ;;  %2856 = vst [vmem:[#allocation52_spill] sm:$0xff] %v2452_v55 }
  0xea   : > { %v2454_v48 = vpop.permute.xlu1 %936  ;;  %v2456_v47 = vpop.permute.xlu0 %933 }
  0xeb   : > { %2857 = vst [vmem:[#allocation53_spill] sm:$0xff] %v2454_v48  ;;  %2858 = vst [vmem:[#allocation54_spill] sm:$0xff] %v2456_v47 }
  0xee   : > { %v2458_v38 = vpop.permute.xlu1 %942  ;;  %v2460_v14 = vpop.permute.xlu0 %939 }
  0xef   : > { %2859 = vst [vmem:[#allocation55_spill] sm:$0xff] %v2458_v38  ;;  %2860 = vst [vmem:[#allocation56_spill] sm:$0xff] %v2460_v14 }
  0xf2   : > { %v2462_v30 = vpop.permute.xlu1 %948  ;;  %v2464_v39 = vpop.permute.xlu0 %945 }
  0xf3   : > { %2861 = vst [vmem:[#allocation57_spill] sm:$0xff] %v2462_v30  ;;  %2862 = vst [vmem:[#allocation58_spill] sm:$0xff] %v2464_v39 }
  0xf6   : > { %v2466_v18 = vpop.permute.xlu1 %954  ;;  %v2468_v31 = vpop.permute.xlu0 %951 }
  0xf7   : > { %2863 = vst [vmem:[#allocation59_spill] sm:$0xff] %v2466_v18  ;;  %2864 = vst [vmem:[#allocation60_spill] sm:$0xff] %v2468_v31 }
  0xfa   : > { %v2470_v19 = vpop.permute.xlu1 %960  ;;  %v2472_v2 = vpop.permute.xlu0 %957 }
  0xfb   : > { %2865 = vst [vmem:[#allocation61_spill] sm:$0xff] %v2470_v19  ;;  %2866 = vst [vmem:[#allocation62_spill] sm:$0xff] %v2472_v2 }
  0xfe   : > { %v967_v11 = vpop.permute.xlu1 %966  ;;  %v964_v47 = vpop.permute.xlu0 %963 }
  0xff   : > { %vm1091_vm1 = vcmp.eq.s32.totalorder %v967_v11, 1  ;;  %vm1090_vm3 = vcmp.eq.s32.totalorder %v964_v47, 1 }
 0x102   : > { %v973_v48 = vpop.permute.xlu1 %972  ;;  %v970_v38 = vpop.permute.xlu0 %969 }
 0x103   : > { %vm1093_vm5 = vcmp.eq.s32.totalorder %v973_v48, 1  ;;  %vm1092_vm7 = vcmp.eq.s32.totalorder %v970_v38, 1 }
 0x106   : > { %v979_v43 = vpop.permute.xlu1 %978  ;;  %v2474_v14 = vpop.permute.xlu0 %975 }
 0x107   : > { %vm1095_vm11 = vcmp.eq.s32.totalorder %v979_v43, 1  ;;  %vm1094_vm13 = vcmp.eq.s32.totalorder %v2474_v14, 1 }
 0x10a   : > { %v2476_v30 = vpop.permute.xlu1 %984  ;;  %v2478_v39 = vpop.permute.xlu0 %981 }
 0x10b   : > { %vm1097_vm15 = vcmp.eq.s32.totalorder %v2476_v30, 1  ;;  %vm1096_vm9 = vcmp.eq.s32.totalorder %v2478_v39, 1 }
 0x10e   : > { %v2480_v18 = vpop.permute.xlu1 %990  ;;  %v2482_v31 = vpop.permute.xlu0 %987 }
 0x112   : > { %v2484_v19 = vpop.permute.xlu1 %996  ;;  %v2486_v2 = vpop.permute.xlu0 %993 }
 0x116   : > { %v2488_v3 = vpop.permute.xlu1 %1002  ;;  %v2490_v55 = vpop.permute.xlu0 %999 }
 0x11a   : > { %v2492_v10 = vpop.permute.xlu1 %1008  ;;  %v2497_v46 = vpop.permute.xlu0 %1005 }
 0x11e   : > { %v2499_v25 = vpop.permute.xlu1 %1014  ;;  %v2510_v58 = vpop.permute.xlu0 %1011 }
 0x122   : > { %v2522_v48 = vpop.permute.xlu1 %1020  ;;  %v2535_v17 = vpop.permute.xlu0 %1017 }
 0x12c   : > { %v1481_v62 = vpop.f32.mrb[0].mxu0 }
 0x12d   : > { %v1123_v56 = vsel %vm1059_vm0, %v1481_v62, %v1964_v8  ;;  %v355_v50 = vpop.f32.mrb[1].mxu0  ;;  %vm1067_vm0 = vcmp.eq.s32.totalorder %v2426_v28, 1  ;;  %v2563_v62 = vpop.permute.xlu0 %1023 }
 0x12e   : > { %1187 = vst [vmem:[%s2504_s5 + $0x8] sm:$0xff] %v1123_v56  ;;  %v1122_v11 = vsel %vm1058_vm2, %v355_v50, %v1923_v29  ;;  %v2549_v50 = vpop.permute.xlu1 %1026  ;;  %vm1066_vm2 = vcmp.eq.s32.totalorder %v2428_v41, 1 }
 0x12f   : > { %v1529_v59 = vpop.f32.mrb[0].mxu1  ;;  %1186 = vst [vmem:[%s2504_s5] sm:$0xff] %v1122_v11 }
 0x130   : > { %v1155_v54 = vsel %vm1091_vm1, %v1529_v59, %v1967_v9  ;;  %v515_v34 = vpop.f32.mrb[1].mxu1  ;;  %v1484_v8 = vpop.f32.mrb[2].mxu0  ;;  %vm1099_vm1 = vcmp.eq.s32.totalorder %v2480_v18, 1  ;;  %v2867_v59 = vld [vmem:[#allocation8_spill] sm:$0xff] }
 0x131   : > { %1219 = vst [vmem:[%s2504_s5 + $0x108] sm:$0xff] %v1155_v54  ;;  %v1154_v47 = vsel %vm1090_vm3, %v515_v34, %v1926_v32  ;;  %v1125_v56 = vsel %vm1061_vm4, %v1484_v8, %v2002_v27  ;;  %v365_v54 = vpop.f32.mrb[3].mxu0  ;;  %vm1098_vm3 = vcmp.eq.s32.totalorder %v2482_v31, 1  ;;  %vm1069_vm4 = vcmp.eq.s32.totalorder %v2430_v44, 1  ;;  %v2869_v8 = vld [vmem:[#allocation10_spill] sm:$0xff] }
 0x132   : > { %1218 = vst [vmem:[%s2504_s5 + $0x100] sm:$0xff] %v1154_v47  ;;  %1189 = vst [vmem:[%s2504_s5 + $0x18] sm:$0xff] %v1125_v56  ;;  %v1124_v5 = vsel %vm1060_vm6, %v365_v54, %v1980_v15  ;;  %vm1068_vm6 = vcmp.eq.s32.totalorder %v2432_v49, 1  ;;  %v2868_v47 = vld [vmem:[#allocation9_spill] sm:$0xff]  ;;  %v2870_v54 = vld [vmem:[#allocation11_spill] sm:$0xff] }
 0x133   : > { %v1532_v9 = vpop.f32.mrb[2].mxu1  ;;  %1188 = vst [vmem:[%s2504_s5 + $0x10] sm:$0xff] %v1124_v5  ;;  %v2591_v5 = vpop.permute.xlu0 %1029 }
 0x134   : > { %v1157_v29 = vsel %vm1093_vm5, %v1532_v9, %v2016_v35  ;;  %v525_v32 = vpop.f32.mrb[3].mxu1  ;;  %v1487_v27 = vpop.f32.mrb[4].mxu0  ;;  %vm1101_vm5 = vcmp.eq.s32.totalorder %v2484_v19, 1 }
 0x135   : > { %1221 = vst [vmem:[%s2504_s5 + $0x118] sm:$0xff] %v1157_v29  ;;  %v1156_v4 = vsel %vm1092_vm7, %v525_v32, %v1983_v16  ;;  %v1127_v15 = vsel %vm1063_vm10, %v1487_v27, %v2042_v45  ;;  %v375_v16 = vpop.f32.mrb[5].mxu0  ;;  %vm1100_vm7 = vcmp.eq.s32.totalorder %v2486_v2, 1  ;;  %v2577_v9 = vpop.permute.xlu1 %1032  ;;  %vm1071_vm10 = vcmp.eq.s32.totalorder %v2434_v60, 1  ;;  %v2871_v32 = vld [vmem:[#allocation12_spill] sm:$0xff] }
 0x136   : > { %1220 = vst [vmem:[%s2504_s5 + $0x110] sm:$0xff] %v1156_v4  ;;  %1191 = vst [vmem:[%s2504_s5 + $0x28] sm:$0xff] %v1127_v15  ;;  %v1126_v34 = vsel %vm1062_vm12, %v375_v16, %v2019_v36  ;;  %vm1070_vm12 = vcmp.eq.s32.totalorder %v2436_v7, 1  ;;  %v2873_v15 = vld [vmem:[#allocation14_spill] sm:$0xff]  ;;  %v2876_v16 = vld [vmem:[#allocation17_spill] sm:$0xff] }
 0x137   : > { %v1535_v35 = vpop.f32.mrb[4].mxu1  ;;  %1190 = vst [vmem:[%s2504_s5 + $0x20] sm:$0xff] %v1126_v34  ;;  %v2877_v34 = vld [vmem:[#allocation18_spill] sm:$0xff] }
 0x138   : > { %v1159_v38 = vsel %vm1095_vm11, %v1535_v35, %v2058_v51  ;;  %v535_v57 = vpop.f32.mrb[5].mxu1  ;;  %v1490_v45 = vpop.f32.mrb[6].mxu0  ;;  %vm1103_vm11 = vcmp.eq.s32.totalorder %v2488_v3, 1  ;;  %v2872_v35 = vld [vmem:[#allocation13_spill] sm:$0xff] }
 0x139   : > { %1223 = vst [vmem:[%s2504_s5 + $0x128] sm:$0xff] %v1159_v38  ;;  %v1158_v43 = vsel %vm1094_vm13, %v535_v57, %v2034_v42  ;;  %v1129_v36 = vsel %vm1065_vm14, %v1490_v45, %v2092_v63  ;;  %v385_v14 = vpop.f32.mrb[7].mxu0  ;;  %vm1102_vm13 = vcmp.eq.s32.totalorder %v2490_v55, 1  ;;  %vm1073_vm14 = vcmp.eq.s32.totalorder %v2438_v12, 1  ;;  %v2605_v38 = vpop.permute.xlu1 %1038 }
 0x13a   : > { %1222 = vst [vmem:[%s2504_s5 + $0x120] sm:$0xff] %v1158_v43  ;;  %1193 = vst [vmem:[%s2504_s5 + $0x38] sm:$0xff] %v1129_v36  ;;  %v1128_v23 = vsel %vm1064_vm8, %v385_v14, %v2061_v52  ;;  %vm1072_vm8 = vcmp.eq.s32.totalorder %v2440_v20, 1  ;;  %v2874_v20 = vld [vmem:[#allocation47_spill] sm:$0xff]  ;;  %v2879_v14 = vld [vmem:[#allocation16_spill] sm:$0xff] }
 0x13b   : > { %v1538_v51 = vpop.f32.mrb[6].mxu1  ;;  %1192 = vst [vmem:[%s2504_s5 + $0x30] sm:$0xff] %v1128_v23  ;;  %v2878_v36 = vld [vmem:[#allocation15_spill] sm:$0xff]  ;;  %v2880_v23 = vld [vmem:[#allocation49_spill] sm:$0xff] }
 0x13c   : > { %v1161_v42 = vsel %vm1097_vm15, %v1538_v51, %v2095_v1  ;;  %v545_v22 = vpop.f32.mrb[7].mxu1  ;;  %v1493_v63 = vpop.f32.mrb[8].mxu0  ;;  %vm1105_vm15 = vcmp.eq.s32.totalorder %v2492_v10, 1 }
 0x13d   : > { %1225 = vst [vmem:[%s2504_s5 + $0x138] sm:$0xff] %v1161_v42  ;;  %v1160_v30 = vsel %vm1096_vm9, %v545_v22, %v2086_v61  ;;  %v1131_v52 = vsel %vm1067_vm0, %v1493_v63, %v2138_v37  ;;  %v395_v39 = vpop.f32.mrb[9].mxu0  ;;  %vm1104_vm9 = vcmp.eq.s32.totalorder %v2497_v46, 1  ;;  %vm1075_vm0 = vcmp.eq.s32.totalorder %v2874_v20, 1  ;;  %v2875_v46 = vld [vmem:[#allocation48_spill] sm:$0xff]  ;;  %v2619_v22 = vpop.permute.xlu0 %1035  ;;  %v2881_v63 = vld [vmem:[#allocation50_spill] sm:$0xff] }
 0x13e   : > { %1224 = vst [vmem:[%s2504_s5 + $0x130] sm:$0xff] %v1160_v30  ;;  %1195 = vst [vmem:[%s2504_s5 + $0x48] sm:$0xff] %v1131_v52  ;;  %v1130_v28 = vsel %vm1066_vm2, %v395_v39, %v2109_v13  ;;  %vm1074_vm2 = vcmp.eq.s32.totalorder %v2875_v46, 1  ;;  %v2899_v20 = vld [vmem:[#allocation56_spill] sm:$0xff]  ;;  %v2901_v46 = vld [vmem:[#allocation34_spill] sm:$0xff] }
 0x13f   : > { %v1541_v1 = vpop.f32.mrb[8].mxu1  ;;  %1194 = vst [vmem:[%s2504_s5 + $0x40] sm:$0xff] %v1130_v28 }
 0x140   : > { %v1163_v61 = vsel %vm1099_vm1, %v1541_v1, %v2141_v40  ;;  %v555_v24 = vpop.f32.mrb[9].mxu1  ;;  %v1496_v37 = vpop.f32.mrb[10].mxu0  ;;  %vm1107_vm1 = vcmp.eq.s32.totalorder %v2499_v25, 1  ;;  %v2882_v1 = vld [vmem:[#allocation21_spill] sm:$0xff] }
 0x141   : > { %1227 = vst [vmem:[%s2504_s5 + $0x148] sm:$0xff] %v1163_v61  ;;  %v1162_v18 = vsel %vm1098_vm3, %v555_v24, %v2867_v59  ;;  %v1133_v13 = vsel %vm1069_vm4, %v1496_v37, %v2207_v6  ;;  %v405_v41 = vpop.f32.mrb[11].mxu0  ;;  %vm1106_vm3 = vcmp.eq.s32.totalorder %v2510_v58, 1  ;;  %vm1077_vm4 = vcmp.eq.s32.totalorder %v2880_v23, 1  ;;  %v2883_v61 = vld [vmem:[#allocation22_spill] sm:$0xff]  ;;  %v2884_v59 = vld [vmem:[#allocation19_spill] sm:$0xff] }
 0x142   : > { %1226 = vst [vmem:[%s2504_s5 + $0x140] sm:$0xff] %v1162_v18  ;;  %1197 = vst [vmem:[%s2504_s5 + $0x58] sm:$0xff] %v1133_v13  ;;  %v1132_v44 = vsel %vm1068_vm6, %v405_v41, %v2868_v47  ;;  %vm1076_vm6 = vcmp.eq.s32.totalorder %v2881_v63, 1  ;;  %v2885_v37 = vld [vmem:[#allocation20_spill] sm:$0xff]  ;;  %v2886_v13 = vld [vmem:[#allocation51_spill] sm:$0xff] }
 0x143   : > { %v1544_v40 = vpop.f32.mrb[10].mxu1  ;;  %1196 = vst [vmem:[%s2504_s5 + $0x50] sm:$0xff] %v1132_v44  ;;  %v2887_v41 = vld [vmem:[#allocation52_spill] sm:$0xff]  ;;  %v2889_v44 = vld [vmem:[#allocation26_spill] sm:$0xff]  ;;  %v2906_v23 = vld [vmem:[#allocation37_spill] sm:$0xff] }
 0x144   : > { %v1165_v31 = vsel %vm1101_vm5, %v1544_v40, %v2210_v21  ;;  %v565_v11 = vpop.f32.mrb[11].mxu1  ;;  %v1499_v6 = vpop.f32.mrb[12].mxu0  ;;  %vm1109_vm5 = vcmp.eq.s32.totalorder %v2522_v48, 1 }
 0x145   : > { %1229 = vst [vmem:[%s2504_s5 + $0x158] sm:$0xff] %v1165_v31  ;;  %v1164_v19 = vsel %vm1100_vm7, %v565_v11, %v2869_v8  ;;  %v1135_v2 = vsel %vm1071_vm10, %v1499_v6, %v2227_v26  ;;  %v415_v56 = vpop.f32.mrb[13].mxu0  ;;  %vm1108_vm7 = vcmp.eq.s32.totalorder %v2535_v17, 1  ;;  %v2633_v40 = vpop.permute.xlu1 %1044  ;;  %vm1079_vm10 = vcmp.eq.s32.totalorder %v2886_v13, 1  ;;  %v2888_v11 = vld [vmem:[#allocation25_spill] sm:$0xff] }
 0x146   : > { %1228 = vst [vmem:[%s2504_s5 + $0x150] sm:$0xff] %v1164_v19  ;;  %1199 = vst [vmem:[%s2504_s5 + $0x68] sm:$0xff] %v1135_v2  ;;  %v1134_v60 = vsel %vm1070_vm12, %v415_v56, %v2870_v54  ;;  %vm1078_vm12 = vcmp.eq.s32.totalorder %v2887_v41, 1  ;;  %v1042_v56 = vpop.permute.xlu0 %1041  ;;  %v2912_v13 = vld [vmem:[#allocation41_spill] sm:$0xff] }
 0x147   : > { %v1547_v21 = vpop.f32.mrb[12].mxu1  ;;  %1198 = vst [vmem:[%s2504_s5 + $0x60] sm:$0xff] %v1134_v60  ;;  %v2893_v60 = vld [vmem:[#allocation54_spill] sm:$0xff] }
 0x148   : > { %v1167_v49 = vsel %vm1103_vm11, %v1547_v21, %v2230_v33  ;;  %v575_v29 = vpop.f32.mrb[13].mxu1  ;;  %v1502_v26 = vpop.f32.mrb[14].mxu0  ;;  %vm1111_vm11 = vcmp.eq.s32.totalorder %v2549_v50, 1  ;;  %v2890_v21 = vld [vmem:[#allocation23_spill] sm:$0xff] }
 0x149   : > { %1231 = vst [vmem:[%s2504_s5 + $0x168] sm:$0xff] %v1167_v49  ;;  %v1166_v3 = vsel %vm1102_vm13, %v575_v29, %v2871_v32  ;;  %v1137_v55 = vsel %vm1073_vm14, %v1502_v26, %v2245_v0  ;;  %v425_v4 = vpop.f32.mrb[15].mxu0  ;;  %vm1110_vm13 = vcmp.eq.s32.totalorder %v2563_v62, 1  ;;  %v2891_v49 = vld [vmem:[#allocation24_spill] sm:$0xff]  ;;  %v2892_v29 = vld [vmem:[#allocation53_spill] sm:$0xff]  ;;  %v2895_v26 = vld [vmem:[#allocation30_spill] sm:$0xff] }
 0x14a   : > { %1230 = vst [vmem:[%s2504_s5 + $0x160] sm:$0xff] %v1166_v3  ;;  %1201 = vst [vmem:[%s2504_s5 + $0x78] sm:$0xff] %v1137_v55  ;;  %v1136_v12 = vsel %vm1072_vm8, %v425_v4, %v2872_v35  ;;  %vm1081_vm14 = vcmp.eq.s32.totalorder %v2892_v29, 1  ;;  %vm1080_vm8 = vcmp.eq.s32.totalorder %v2893_v60, 1  ;;  %v2894_v32 = vld [vmem:[#allocation29_spill] sm:$0xff]  ;;  %v2896_v4 = vld [vmem:[#allocation27_spill] sm:$0xff] }
 0x14b   : > { %v1550_v33 = vpop.f32.mrb[14].mxu1  ;;  %1200 = vst [vmem:[%s2504_s5 + $0x70] sm:$0xff] %v1136_v12  ;;  %v2897_v35 = vld [vmem:[#allocation28_spill] sm:$0xff]  ;;  %v1051_v12 = vpop.permute.xlu1 %1050  ;;  %v2918_v29 = vld [vmem:[#allocation45_spill] sm:$0xff] }
 0x14c   : > { %v1169_v7 = vsel %vm1105_vm15, %v1550_v33, %v2248_v53  ;;  %v585_v27 = vpop.f32.mrb[15].mxu1  ;;  %v1505_v0 = vpop.f32.mrb[16].mxu0  ;;  %vm1113_vm15 = vcmp.eq.s32.totalorder %v2577_v9, 1 }
 0x14d   : > { %1233 = vst [vmem:[%s2504_s5 + $0x178] sm:$0xff] %v1169_v7  ;;  %v1168_v10 = vsel %vm1104_vm9, %v585_v27, %v2873_v15  ;;  %v1139_v57 = vsel %vm1075_vm0, %v1505_v0, %v2876_v16  ;;  %v435_v45 = vpop.f32.mrb[17].mxu0  ;;  %vm1112_vm9 = vcmp.eq.s32.totalorder %v2591_v5, 1  ;;  %v2898_v15 = vld [vmem:[#allocation55_spill] sm:$0xff]  ;;  %v2900_v0 = vld [vmem:[#allocation33_spill] sm:$0xff] }
 0x14e   : > { %1232 = vst [vmem:[%s2504_s5 + $0x170] sm:$0xff] %v1168_v10  ;;  %1203 = vst [vmem:[%s2504_s5 + $0x88] sm:$0xff] %v1139_v57  ;;  %v1138_v42 = vsel %vm1074_vm2, %v435_v45, %v2878_v36  ;;  %vm1083_vm0 = vcmp.eq.s32.totalorder %v2898_v15, 1  ;;  %vm1082_vm2 = vcmp.eq.s32.totalorder %v2899_v20, 1  ;;  %v1048_v36 = vpop.permute.xlu0 %1047 }
 0x14f   : > { %v1553_v53 = vpop.f32.mrb[16].mxu1  ;;  %1202 = vst [vmem:[%s2504_s5 + $0x80] sm:$0xff] %v1138_v42  ;;  %v2904_v42 = vld [vmem:[#allocation57_spill] sm:$0xff] }
 0x150   : > { %v1171_v43 = vsel %vm1107_vm1, %v1553_v53, %v2877_v34  ;;  %v595_v51 = vpop.f32.mrb[17].mxu1  ;;  %v1508_v58 = vpop.f32.mrb[18].mxu0  ;;  %vm1115_vm1 = vcmp.eq.s32.totalorder %v2605_v38, 1 }
 0x151   : > { %1235 = vst [vmem:[%s2504_s5 + $0x188] sm:$0xff] %v1171_v43  ;;  %v1170_v25 = vsel %vm1106_vm3, %v595_v51, %v2879_v14  ;;  %v1141_v52 = vsel %vm1077_vm4, %v1508_v58, %v2882_v1  ;;  %v445_v24 = vpop.f32.mrb[19].mxu0  ;;  %vm1114_vm3 = vcmp.eq.s32.totalorder %v2619_v22, 1  ;;  %v2902_v43 = vld [vmem:[#allocation31_spill] sm:$0xff]  ;;  %v2903_v51 = vld [vmem:[#allocation32_spill] sm:$0xff]  ;;  %vm1085_vm4 = vcmp.eq.s32.totalorder %v2904_v42, 1 }
 0x152   : > { %1234 = vst [vmem:[%s2504_s5 + $0x180] sm:$0xff] %v1170_v25  ;;  %1205 = vst [vmem:[%s2504_s5 + $0x98] sm:$0xff] %v1141_v52  ;;  %v1140_v18 = vsel %vm1076_vm6, %v445_v24, %v2884_v59  ;;  %v2905_v22 = vld [vmem:[#allocation58_spill] sm:$0xff]  ;;  %v2909_v24 = vld [vmem:[#allocation36_spill] sm:$0xff]  ;;  %v1057_v59 = vpop.permute.xlu1 %1056 }
 0x153   : > { %v1556_v30 = vpop.f32.mrb[18].mxu1  ;;  %1204 = vst [vmem:[%s2504_s5 + $0x90] sm:$0xff] %v1140_v18  ;;  %vm1084_vm6 = vcmp.eq.s32.totalorder %v2905_v22, 1  ;;  %v2910_v18 = vld [vmem:[#allocation59_spill] sm:$0xff] }
 0x154   : > { %v1173_v39 = vsel %vm1109_vm5, %v1556_v30, %v2883_v61  ;;  %v605_v28 = vpop.f32.mrb[19].mxu1  ;;  %v1511_v17 = vpop.f32.mrb[20].mxu0  ;;  %vm1117_vm5 = vcmp.eq.s32.totalorder %v2633_v40, 1  ;;  %v2907_v30 = vld [vmem:[#allocation38_spill] sm:$0xff]  ;;  %v2908_v61 = vld [vmem:[#allocation35_spill] sm:$0xff]  ;;  %v2911_v40 = vld [vmem:[#allocation60_spill] sm:$0xff] }
 0x155   : > { %1237 = vst [vmem:[%s2504_s5 + $0x198] sm:$0xff] %v1173_v39  ;;  %v1172_v48 = vsel %vm1108_vm7, %v605_v28, %v2885_v37  ;;  %v1143_v47 = vsel %vm1079_vm10, %v1511_v17, %v2888_v11  ;;  %v455_v19 = vpop.f32.mrb[21].mxu0  ;;  %vm1116_vm7 = vcmp.eq.s32.totalorder %v1042_v56, 1  ;;  %vm1087_vm10 = vcmp.eq.s32.totalorder %v2910_v18, 1  ;;  %v2917_v56 = vld [vmem:[#allocation62_spill] sm:$0xff] }
 0x156   : > { %1236 = vst [vmem:[%s2504_s5 + $0x190] sm:$0xff] %v1172_v48  ;;  %1207 = vst [vmem:[%s2504_s5 + $0xa8] sm:$0xff] %v1143_v47  ;;  %v1142_v2 = vsel %vm1078_vm12, %v455_v19, %v2890_v21  ;;  %vm1086_vm12 = vcmp.eq.s32.totalorder %v2911_v40, 1 }
 0x157   : > { %v1559_v31 = vpop.f32.mrb[20].mxu1  ;;  %1206 = vst [vmem:[%s2504_s5 + $0xa0] sm:$0xff] %v1142_v2  ;;  %v2916_v2 = vld [vmem:[#allocation61_spill] sm:$0xff] }
 0x158   : > { %v1175_v8 = vsel %vm1111_vm11, %v1559_v31, %v2889_v44  ;;  %v615_v6 = vpop.f32.mrb[21].mxu1  ;;  %v1514_v62 = vpop.f32.mrb[22].mxu0  ;;  %vm1119_vm11 = vcmp.eq.s32.totalorder %v1051_v12, 1  ;;  %v2913_v31 = vld [vmem:[#allocation42_spill] sm:$0xff] }
 0x159   : > { %1239 = vst [vmem:[%s2504_s5 + $0x1a8] sm:$0xff] %v1175_v8  ;;  %v1174_v50 = vsel %vm1110_vm13, %v615_v6, %v2891_v49  ;;  %v1145_v3 = vsel %vm1081_vm14, %v1514_v62, %v2894_v32  ;;  %v465_v55 = vpop.f32.mrb[23].mxu0  ;;  %vm1118_vm13 = vcmp.eq.s32.totalorder %v1048_v36, 1  ;;  %v1054_v44 = vpop.permute.xlu0 %1053  ;;  %v2914_v8 = vld [vmem:[#allocation39_spill] sm:$0xff]  ;;  %v2915_v6 = vld [vmem:[#allocation40_spill] sm:$0xff]  ;;  %vm1089_vm14 = vcmp.eq.s32.totalorder %v2916_v2, 1 }
 0x15a   : > { %1238 = vst [vmem:[%s2504_s5 + $0x1a0] sm:$0xff] %v1174_v50  ;;  %1209 = vst [vmem:[%s2504_s5 + $0xb8] sm:$0xff] %v1145_v3  ;;  %v1144_v27 = vsel %vm1080_vm8, %v465_v55, %v2896_v4  ;;  %vm1088_vm8 = vcmp.eq.s32.totalorder %v2917_v56, 1  ;;  %v2921_v55 = vld [vmem:[#allocation44_spill] sm:$0xff] }
 0x15b   : > { %v1562_v54 = vpop.f32.mrb[22].mxu1  ;;  %1208 = vst [vmem:[%s2504_s5 + $0xb0] sm:$0xff] %v1144_v27 }
 0x15c   : > { %v1177_v33 = vsel %vm1113_vm15, %v1562_v54, %v2895_v26  ;;  %v625_v7 = vpop.f32.mrb[23].mxu1  ;;  %v1517_v5 = vpop.f32.mrb[24].mxu0  ;;  %vm1121_vm15 = vcmp.eq.s32.totalorder %v1057_v59, 1  ;;  %v2919_v54 = vld [vmem:[#allocation46_spill] sm:$0xff]  ;;  %v2920_v26 = vld [vmem:[#allocation43_spill] sm:$0xff] }
 0x15d   : > { %1241 = vst [vmem:[%s2504_s5 + $0x1b8] sm:$0xff] %v1177_v33  ;;  %v1176_v9 = vsel %vm1112_vm9, %v625_v7, %v2897_v35  ;;  %v1147_v53 = vsel %vm1083_vm0, %v1517_v5, %v2900_v0  ;;  %v475_v57 = vpop.f32.mrb[25].mxu0  ;;  %vm1120_vm9 = vcmp.eq.s32.totalorder %v1054_v44, 1 }
 0x15e   : > { %1240 = vst [vmem:[%s2504_s5 + $0x1b0] sm:$0xff] %v1176_v9  ;;  %1211 = vst [vmem:[%s2504_s5 + $0xc8] sm:$0xff] %v1147_v53  ;;  %v1146_v45 = vsel %vm1082_vm2, %v475_v57, %v2902_v43 }
 0x15f   : > { %v1565_v10 = vpop.f32.mrb[24].mxu1  ;;  %1210 = vst [vmem:[%s2504_s5 + $0xc0] sm:$0xff] %v1146_v45 }
 0x160   : > { %v1179_v16 = vsel %vm1115_vm1, %v1565_v10, %v2901_v46  ;;  %v635_v34 = vpop.f32.mrb[25].mxu1  ;;  %v1520_v14 = vpop.f32.mrb[26].mxu0 }
 0x161   : > { %1243 = vst [vmem:[%s2504_s5 + $0x1c8] sm:$0xff] %v1179_v16  ;;  %v1178_v38 = vsel %vm1114_vm3, %v635_v34, %v2903_v51  ;;  %v1149_v58 = vsel %vm1085_vm4, %v1520_v14, %v2906_v23  ;;  %v485_v1 = vpop.f32.mrb[27].mxu0 }
 0x162   : > { %1242 = vst [vmem:[%s2504_s5 + $0x1c0] sm:$0xff] %v1178_v38  ;;  %1213 = vst [vmem:[%s2504_s5 + $0xd8] sm:$0xff] %v1149_v58  ;;  %v1148_v39 = vsel %vm1084_vm6, %v485_v1, %v2908_v61 }
 0x163   : > { %v1568_v25 = vpop.f32.mrb[26].mxu1  ;;  %1212 = vst [vmem:[%s2504_s5 + $0xd0] sm:$0xff] %v1148_v39 }
 0x164   : > { %v1181_v63 = vsel %vm1117_vm5, %v1568_v25, %v2907_v30  ;;  %v645_v52 = vpop.f32.mrb[27].mxu1  ;;  %v1523_v37 = vpop.f32.mrb[28].mxu0 }
 0x165   : > { %1245 = vst [vmem:[%s2504_s5 + $0x1d8] sm:$0xff] %v1181_v63  ;;  %v1180_v28 = vsel %vm1116_vm7, %v645_v52, %v2909_v24  ;;  %v1151_v17 = vsel %vm1087_vm10, %v1523_v37, %v2912_v13  ;;  %v495_v11 = vpop.f32.mrb[29].mxu0 }
 0x166   : > { %1244 = vst [vmem:[%s2504_s5 + $0x1d0] sm:$0xff] %v1180_v28  ;;  %1215 = vst [vmem:[%s2504_s5 + $0xe8] sm:$0xff] %v1151_v17  ;;  %v1150_v19 = vsel %vm1086_vm12, %v495_v11, %v2914_v8 }
 0x167   : > { %v1571_v48 = vpop.f32.mrb[28].mxu1  ;;  %1214 = vst [vmem:[%s2504_s5 + $0xe0] sm:$0xff] %v1150_v19 }
 0x168   : > { %v1183_v41 = vsel %vm1119_vm11, %v1571_v48, %v2913_v31  ;;  %v655_v47 = vpop.f32.mrb[29].mxu1  ;;  %v1526_v49 = vpop.f32.mrb[30].mxu0 }
 0x169   : > { %1247 = vst [vmem:[%s2504_s5 + $0x1e8] sm:$0xff] %v1183_v41  ;;  %v1182_v21 = vsel %vm1118_vm13, %v655_v47, %v2915_v6  ;;  %v1153_v62 = vsel %vm1089_vm14, %v1526_v49, %v2918_v29  ;;  %v505_v32 = vpop.f32.mrb[31].mxu0 }
 0x16a   : > { %1246 = vst [vmem:[%s2504_s5 + $0x1e0] sm:$0xff] %v1182_v21  ;;  %1217 = vst [vmem:[%s2504_s5 + $0xf8] sm:$0xff] %v1153_v62  ;;  %v1152_v33 = vsel %vm1088_vm8, %v505_v32, %v2920_v26 }
 0x16b   : > { %v1574_v50 = vpop.f32.mrb[30].mxu1  ;;  %1216 = vst [vmem:[%s2504_s5 + $0xf0] sm:$0xff] %v1152_v33 }
 0x16c   : > { %v1185_v60 = vsel %vm1121_vm15, %v1574_v50, %v2919_v54  ;;  %v665_v3 = vpop.f32.mrb[31].mxu1 }
 0x16d   : > { %1249 = vst [vmem:[%s2504_s5 + $0x1f8] sm:$0xff] %v1185_v60  ;;  %v1184_v7 = vsel %vm1120_vm9, %v665_v3, %v2921_v55 }
 0x16e   : > { %1248 = vst [vmem:[%s2504_s5 + $0x1f0] sm:$0xff] %v1184_v7 }
 0x16f   : > { %1721 = shalt.err (!%p1718_p7)
}
 0x170   : > { %s1722_s24 = scalar_lea.hbm %s2700_s9, 8192  ;;  %s1726_s27 = scalar_lea.hbm %s2759_s3, 16384 }
 0x171   : > { %p1723_p8 = scmp.ne.s32.totalorder %s2700_s9, %s1722_s24  ;;  %p1727_p1 = scmp.lt.u32.totalorder %s2700_s9, %s2759_s3 }
 0x172   : > { %p1728_p0 = scmp.lt.u32.totalorder %s1726_s27, %s1722_s24  ;;  %p1730_p6 = scmp.lt.u32.totalorder %s1722_s24, %s2700_s9 }
 0x173   : > { %p1724_p11 = pnand %p1723_p8, %p2922_p9 }
 0x174   : > { %p1729_p5 = por %p1728_p0, %p1727_p1 }
 0x175   : > { %p1725_p13 = pneg %p1724_p11 }
 0x176   : > { %p1731_p10 = por %p1730_p6, %p1729_p5 }
 0x178   : > { %p1732_p12 = pnand %p1731_p10, %p1725_p13 }
 0x17a   : > { %1735 = shalt.err (!%p1732_p12)
}
 0x17b   : > { %s1781_s30 = smov 128   ;;  %s1782_s4 = smov 8  }
 0x17c   : > { %1627 = dma.vmem_to_hbm [thread:$0]  (%p2922_p9), %s2702_s7, 8192, %s2700_s9, %s2715_s10, %s1781_s30, %s1781_s30, %s1782_s4  }
 0x17d PF: > { %p1639_p2 = scmp.ge.s32.totalorder %s1774_s15, 2  ;;  %s1279_s5 = sand.u32 1, %s1762_s12  }
 0x17e   : > { %p2923_p3 = scmp.ne.s32.totalorder %s2805_s23, 0  ;;  %s1280_s6 = scalar_lea.sflag [#allocation4], %s1279_s5 }
 0x180   : > { %p1634_p4 = pnand %p1639_p2, %p2923_p3 }
 0x182   : > { %1757 = dma.done.wait (!%p1634_p4), %s1280_s6, 8192  }
 0x183   : > { %1759 = vsyncadd (!%p1634_p4), %s1280_s6, 4294959104  ;;  %p14_p7 = scmp.ge.s32.totalorder %s1828_s18, 4   ;;  %s2924_s12 = smov %s1766_s13 }
 0x184   : > { %s2925_s13 = smov %s1770_s14  ;;  %s2926_s14 = smov %s1839_s21 }
 0x185   : > { %s2927_s15 = smov %s1828_s18  ;;  %16 = sbr.rel (!%p14_p7) target bundleno = 4 (0x4), region = 75 }
 0x18c   :  { %1285 = vsyncpa [#allocation3], 1 }
 0x18d   :  { %1287 = vsyncpa [#allocation3 + $0x1], 1 }
 0x18e   :  { %1288 = vsyncpa [#allocation4], 1 }
 0x18f   :  { %1290 = vsyncpa [#allocation4 + $0x1], 1 }

</bundles_post_ra>
